<compile_context>
chip_gen: v7x
topology: tpu7x:2x2x1
jax: 0.10.0
libtpu: 0.0.40
codegen_flags: <defaults>
</compile_context>

<pallas_src>
import math
import jax
import jax.numpy as jnp
from jax.experimental import pallas as pl
from jax.experimental.pallas import tpu as pltpu


def make_mha_kernel(num_heads, d_k, bt, seq, d_model, compute_dtype, eps=1e-5):
    M = bt * seq  # rows per grid step

    def kernel(x_ref, wqkv_ref, wo_ref, bo_ref, g_ref, b_ref, o_ref):
        xm = x_ref[...]                              # (M, D) float32
        xc = xm.astype(compute_dtype)

        # Fused fat-M Q/K/V projection: one MXU dispatch, lane width 3*D.
        # (attention scale 1/sqrt(d_k) is folded into the W_q columns).
        qkv = jnp.dot(xc, wqkv_ref[...],
                      preferred_element_type=jnp.float32)        # (M, 3D) f32

        # Per-head attention with bt-batched 3-D einsums (single leading batch
        # dim -> the documented-supported dot_general form).  H is a small
        # static constant, the loop is fully unrolled at trace time.
        ctx_heads = []
        for h in range(num_heads):
            lo = h * d_k
            qh = qkv[:, lo:lo + d_k].reshape(bt, seq, d_k).astype(compute_dtype)
            kh = qkv[:, d_model + lo:d_model + lo + d_k] \
                .reshape(bt, seq, d_k).astype(compute_dtype)
            vh = qkv[:, 2 * d_model + lo:2 * d_model + lo + d_k] \
                .reshape(bt, seq, d_k).astype(compute_dtype)

            s = jnp.einsum('bqd,bkd->bqk', qh, kh,
                           preferred_element_type=jnp.float32)   # (bt, S, S)
            m = jnp.max(s, axis=-1, keepdims=True)
            e = jnp.exp(s - m)
            # Exact divide (no approx reciprocal): softmax rows sum to 1, keeps
            # the f32 path within ~1e-5 of the reference.
            p = e / jnp.sum(e, axis=-1, keepdims=True)

            ctx_heads.append(
                jnp.einsum('bqk,bkd->bqd', p.astype(compute_dtype), vh,
                           preferred_element_type=jnp.float32))  # (bt, S, dk)

        # Single full-depth (K = D) output projection instead of H accumulated
        # K=d_k matmuls against sublane slices of W_o.
        ctx = jnp.concatenate(ctx_heads, axis=-1).reshape(M, d_model)
        out = jnp.dot(ctx.astype(compute_dtype), wo_ref[...],
                      preferred_element_type=jnp.float32) + bo_ref[...]

        y = xm + out                                 # residual (f32)

        # LayerNorm over last dim (PyTorch default eps, biased variance), f32.
        mu = jnp.mean(y, axis=-1, keepdims=True)
        var = jnp.mean((y - mu) ** 2, axis=-1, keepdims=True)
        yn = (y - mu) * jax.lax.rsqrt(var + eps)
        o_ref[...] = (yn * g_ref[...] + b_ref[...]).astype(o_ref.dtype)

    return kernel


def _default_num_tensorcores():
    """Best-effort TC-per-chip detection (v7x has 2; v5e/v6e have 1)."""
    try:
        kind = jax.devices()[0].device_kind.lower()
    except Exception:
        return 1
    return 2 if ("v7" in kind or "7x" in kind) else 1


def _choose_batch_block(B, S, D, num_tc=1, vmem_budget_bytes=24 << 20):
    """Largest legal batch block.

    Single-TC chips: collapse the grid toward one step (per-step overhead
    ~0.35us; bigger M amortizes MXU weight pushes and DMA setup).  Multi-TC
    chips (v7x): keep >= num_tc grid steps so dimension_semantics=("parallel",)
    can spread them, and respect the smaller per-TC VMEM via the budget.
    Guards BlockSpec legality: bt*S must be a multiple of 8 or the full extent.
    """
    def legal(bt):
        rows = bt * S
        return B % bt == 0 and (bt == B or rows % 8 == 0)

    def fits(bt):
        rows = bt * S
        # Rough f32 working set: x / qkv(3) / ctx / out / y row slabs + one
        # head's score/exp/prob tensors.
        return rows * D * 4 * 8 + bt * S * S * 4 * 3 <= vmem_budget_bytes

    target = max(1, B // max(1, num_tc))
    for bt in range(target, 0, -1):
        if legal(bt) and fits(bt):
            return bt
    return B  # single full block is always BlockSpec-legal


def multi_head_self_attention(x, params, num_heads, *,
                              compute_dtype=jnp.bfloat16,
                              num_tc=None,
                              single_buffer_weights=False,
                              vmem_limit_bytes=None):
    """x: (B, S, D) float32. params: dict of weights in PyTorch layout.

    compute_dtype: MXU input dtype (bf16 default; softmax/LayerNorm stay f32).
    single_buffer_weights: set True on v7x / large D to single-buffer the
      constant-index weight BlockSpecs (pl.Buffered(1)) and save VMEM.
    """
    B, S, D = x.shape
    assert D % num_heads == 0
    d_k = D // num_heads
    scale = 1.0 / math.sqrt(d_k)

    # nn.Linear stores weight as (out, in); y = x @ W.T.  Pre-transpose once,
    # fold the attention scale into W_q, and fuse Q/K/V into one (D, 3D) weight.
    wqkv = jnp.concatenate(
        [params["w_q"].T * scale, params["w_k"].T, params["w_v"].T],
        axis=1).astype(compute_dtype)                       # (D, 3D)
    wo_t = params["w_o"].T.astype(compute_dtype)            # (D, D)
    bo = params["b_o"].reshape(1, D).astype(jnp.float32)
    gamma = params["ln_gamma"].reshape(1, D).astype(jnp.float32)
    beta = params["ln_beta"].reshape(1, D).astype(jnp.float32)

    if num_tc is None:
        num_tc = _default_num_tensorcores()
    bt = _choose_batch_block(B, S, D, num_tc)
    nb = B // bt
    x2 = x.reshape(B * S, D)          # wrapper-side flatten (free in XLA)

    kernel = make_mha_kernel(num_heads, d_k, bt, S, D, compute_dtype)

    # Constant-index weight/bias specs; optionally single-buffered (v7x).
    wkw = {"pipeline_mode": pl.Buffered(1)} if single_buffer_weights else {}
    wqkv_spec = pl.BlockSpec((D, 3 * D), lambda b: (0, 0), **wkw)
    wo_spec = pl.BlockSpec((D, D), lambda b: (0, 0), **wkw)
    vec_spec = pl.BlockSpec((1, D), lambda b: (0, 0), **wkw)

    out2 = pl.pallas_call(
        kernel,
        out_shape=jax.ShapeDtypeStruct((B * S, D), jnp.float32),
        grid_spec=pltpu.PrefetchScalarGridSpec(
            num_scalar_prefetch=0,
            grid=(nb,),
            in_specs=[
                pl.BlockSpec((bt * S, D), lambda b: (b, 0)),   # x rows
                wqkv_spec, wo_spec,                            # fused QKV, W_o
                vec_spec, vec_spec, vec_spec,                  # b_o, gamma, beta
            ],
            out_specs=pl.BlockSpec((bt * S, D), lambda b: (b, 0)),
        ),
        compiler_params=pltpu.CompilerParams(
            dimension_semantics=("parallel",),
            vmem_limit_bytes=vmem_limit_bytes),
    )(x2, wqkv, wo_t, bo, gamma, beta)

    return out2.reshape(B, S, D)


def init_params(key, d_model):
    """Deterministic synthetic init: xavier-uniform projections (as the module),
    small uniform output bias, ones/zeros LayerNorm (nn defaults)."""
    keys = jax.random.split(key, 5)
    bound = math.sqrt(6.0 / (d_model + d_model))

    def xav(k):
        return jax.random.uniform(k, (d_model, d_model), jnp.float32, -bound, bound)

    return {
        "w_q": xav(keys[0]),
        "w_k": xav(keys[1]),
        "w_v": xav(keys[2]),
        "w_o": xav(keys[3]),
        "b_o": jax.random.uniform(keys[4], (d_model,), jnp.float32, -0.1, 0.1),
        "ln_gamma": jnp.ones((d_model,), jnp.float32),
        "ln_beta": jnp.zeros((d_model,), jnp.float32),
    }


def reference(x, params, num_heads):
    """Pure-JAX reference matching the PyTorch forward (eval mode)."""
    B, S, D = x.shape
    d_k = D // num_heads
    q = x @ params["w_q"].T
    k = x @ params["w_k"].T
    v = x @ params["w_v"].T

    def split(t):
        return t.reshape(B, S, num_heads, d_k).transpose(0, 2, 1, 3)

    Q, K, V = split(q), split(k), split(v)
    scores = jnp.einsum("bhqd,bhkd->bhqk", Q, K) / math.sqrt(d_k)
    attn = jax.nn.softmax(scores, axis=-1)
    ctx = jnp.einsum("bhqk,bhkd->bhqd", attn, V)
    ctx = ctx.transpose(0, 2, 1, 3).reshape(B, S, D)
    out = ctx @ params["w_o"].T + params["b_o"]
    y = x + out
    mu = jnp.mean(y, axis=-1, keepdims=True)
    var = jnp.mean((y - mu) ** 2, axis=-1, keepdims=True)
    yn = (y - mu) / jnp.sqrt(var + 1e-5)
    return yn * params["ln_gamma"] + params["ln_beta"]


if __name__ == "__main__":
    B, S, D, H = 4, 8, 32, 4   # batch, seq, d_model, num_heads (d_k = 8)
    key = jax.random.PRNGKey(0)
    kx, kp = jax.random.split(key)
    x = jax.random.normal(kx, (B, S, D), jnp.float32)
    params = init_params(kp, D)
    ref = reference(x, params, H)

    # f32 MXU path: exact softmax divide -> tight tolerance vs f32 reference.
    out_f32 = jax.block_until_ready(
        multi_head_self_attention(x, params, H, compute_dtype=jnp.float32))
    assert out_f32.shape == (B, S, D)
    err_f32 = float(jnp.max(jnp.abs(out_f32 - ref)))
    assert err_f32 < 1e-4, f"f32 path mismatch vs reference: max abs err {err_f32}"

    # Default bf16-MXU path (review: ~2x MXU throughput on v5e/v6e/v7x; softmax
    # stats / LayerNorm remain f32).  Tolerance reflects bf16 input rounding
    # relative to the exact f32 reference.
    out_bf16 = jax.block_until_ready(multi_head_self_attention(x, params, H))
    assert out_bf16.shape == (B, S, D)
    err_bf16 = float(jnp.max(jnp.abs(out_bf16 - ref)))
    assert err_bf16 < 1e-1, f"bf16 path mismatch vs reference: max abs err {err_bf16}"

    print("KERNEL_OK")
</pallas_src>

<mosaic_0001>
module attributes {stable_mosaic.version = 11 : i64} {
  func.func @kernel(%arg0: i32, %arg1: memref<32x32xf32, #tpu.memory_space<vmem>>, %arg2: memref<32x96xf32, #tpu.memory_space<vmem>>, %arg3: memref<32x32xf32, #tpu.memory_space<vmem>>, %arg4: memref<1x32xf32, #tpu.memory_space<vmem>>, %arg5: memref<1x32xf32, #tpu.memory_space<vmem>>, %arg6: memref<1x32xf32, #tpu.memory_space<vmem>>, %arg7: memref<32x32xf32, #tpu.memory_space<vmem>>) attributes {dimension_semantics = [#tpu.dimension_semantics<parallel>], iteration_bounds = array<i64: 1>, scalar_prefetch = 0 : i64, scratch_operands = 0 : i64, tpu.core_type = #tpu.core_type<tc>, window_params = [{transform_indices = @transform_0, window_bounds = array<i64: 32, 32>}, {pipeline_mode = #tpu.pipeline_mode<synchronous>, transform_indices = @transform_1, window_bounds = array<i64: 32, 96>}, {pipeline_mode = #tpu.pipeline_mode<synchronous>, transform_indices = @transform_2, window_bounds = array<i64: 32, 32>}, {pipeline_mode = #tpu.pipeline_mode<synchronous>, transform_indices = @transform_3, window_bounds = array<i64: 1, 32>}, {pipeline_mode = #tpu.pipeline_mode<synchronous>, transform_indices = @transform_4, window_bounds = array<i64: 1, 32>}, {pipeline_mode = #tpu.pipeline_mode<synchronous>, transform_indices = @transform_5, window_bounds = array<i64: 1, 32>}, {transform_indices = @transform_6, window_bounds = array<i64: 32, 32>}]} {
    %c0 = arith.constant 0 : index
    %c0_0 = arith.constant 0 : index
    %0 = vector.load %arg1[%c0, %c0_0] : memref<32x32xf32, #tpu.memory_space<vmem>>, vector<32x32xf32>
    %c0_1 = arith.constant 0 : index
    %c0_2 = arith.constant 0 : index
    %1 = vector.load %arg2[%c0_1, %c0_2] : memref<32x96xf32, #tpu.memory_space<vmem>>, vector<32x96xf32>
    %cst = arith.constant dense<0.000000e+00> : vector<32x96xf32>
    %2 = tpu.matmul %0, %1, %cst {dimension_numbers = #tpu.dot_dimension_numbers<[1], [0], [0], [1], [0, 0, 1, 1], [], []>} : vector<32x32xf32>, vector<32x96xf32>, vector<32x96xf32> -> vector<32x96xf32>
    %3 = vector.extract_strided_slice %2 {offsets = [0, 0], sizes = [32, 8], strides = [1, 1]} : vector<32x96xf32> to vector<32x8xf32>
    %4 = vector.shape_cast %3 : vector<32x8xf32> to vector<4x8x8xf32>
    %5 = vector.extract_strided_slice %2 {offsets = [0, 32], sizes = [32, 8], strides = [1, 1]} : vector<32x96xf32> to vector<32x8xf32>
    %6 = vector.shape_cast %5 : vector<32x8xf32> to vector<4x8x8xf32>
    %7 = vector.extract_strided_slice %2 {offsets = [0, 64], sizes = [32, 8], strides = [1, 1]} : vector<32x96xf32> to vector<32x8xf32>
    %8 = vector.shape_cast %7 : vector<32x8xf32> to vector<4x8x8xf32>
    "tpu.trace_start"() <{level = 10 : i32, message = "bqd,bkd->bqk"}> : () -> ()
    %cst_3 = arith.constant dense<0.000000e+00> : vector<4x8x8xf32>
    %9 = tpu.matmul %4, %6, %cst_3 {dimension_numbers = #tpu.dot_dimension_numbers<[2], [2], [1], [1], [0, 0, 0, 1, 1, 1], [0], [0]>} : vector<4x8x8xf32>, vector<4x8x8xf32>, vector<4x8x8xf32> -> vector<4x8x8xf32>
    "tpu.trace_stop"() : () -> ()
    %cst_4 = arith.constant dense<0xFF800000> : vector<4x8xf32>
    %10 = vector.multi_reduction <maximumf>, %9, %cst_4 [2] : vector<4x8x8xf32> to vector<4x8xf32>
    %11 = vector.shape_cast %10 : vector<4x8xf32> to vector<4x8x1xf32>
    %12 = vector.broadcast %11 : vector<4x8x1xf32> to vector<4x8x8xf32>
    %13 = arith.subf %9, %12 : vector<4x8x8xf32>
    %14 = math.exp %13 : vector<4x8x8xf32>
    %cst_5 = arith.constant dense<0.000000e+00> : vector<4x8xf32>
    %15 = vector.multi_reduction <add>, %14, %cst_5 [2] : vector<4x8x8xf32> to vector<4x8xf32>
    %16 = vector.shape_cast %15 : vector<4x8xf32> to vector<4x8x1xf32>
    %17 = vector.broadcast %16 : vector<4x8x1xf32> to vector<4x8x8xf32>
    %18 = arith.divf %14, %17 : vector<4x8x8xf32>
    "tpu.trace_start"() <{level = 10 : i32, message = "bqk,bkd->bqd"}> : () -> ()
    %cst_6 = arith.constant dense<0.000000e+00> : vector<4x8x8xf32>
    %19 = tpu.matmul %18, %8, %cst_6 {dimension_numbers = #tpu.dot_dimension_numbers<[2], [1], [1], [2], [0, 0, 0, 1, 1, 2], [0], [0]>} : vector<4x8x8xf32>, vector<4x8x8xf32>, vector<4x8x8xf32> -> vector<4x8x8xf32>
    "tpu.trace_stop"() : () -> ()
    %20 = vector.extract_strided_slice %2 {offsets = [0, 8], sizes = [32, 8], strides = [1, 1]} : vector<32x96xf32> to vector<32x8xf32>
    %21 = vector.shape_cast %20 : vector<32x8xf32> to vector<4x8x8xf32>
    %22 = vector.extract_strided_slice %2 {offsets = [0, 40], sizes = [32, 8], strides = [1, 1]} : vector<32x96xf32> to vector<32x8xf32>
    %23 = vector.shape_cast %22 : vector<32x8xf32> to vector<4x8x8xf32>
    %24 = vector.extract_strided_slice %2 {offsets = [0, 72], sizes = [32, 8], strides = [1, 1]} : vector<32x96xf32> to vector<32x8xf32>
    %25 = vector.shape_cast %24 : vector<32x8xf32> to vector<4x8x8xf32>
    "tpu.trace_start"() <{level = 10 : i32, message = "bqd,bkd->bqk"}> : () -> ()
    %cst_7 = arith.constant dense<0.000000e+00> : vector<4x8x8xf32>
    %26 = tpu.matmul %21, %23, %cst_7 {dimension_numbers = #tpu.dot_dimension_numbers<[2], [2], [1], [1], [0, 0, 0, 1, 1, 1], [0], [0]>} : vector<4x8x8xf32>, vector<4x8x8xf32>, vector<4x8x8xf32> -> vector<4x8x8xf32>
    "tpu.trace_stop"() : () -> ()
    %cst_8 = arith.constant dense<0xFF800000> : vector<4x8xf32>
    %27 = vector.multi_reduction <maximumf>, %26, %cst_8 [2] : vector<4x8x8xf32> to vector<4x8xf32>
    %28 = vector.shape_cast %27 : vector<4x8xf32> to vector<4x8x1xf32>
    %29 = vector.broadcast %28 : vector<4x8x1xf32> to vector<4x8x8xf32>
    %30 = arith.subf %26, %29 : vector<4x8x8xf32>
    %31 = math.exp %30 : vector<4x8x8xf32>
    %cst_9 = arith.constant dense<0.000000e+00> : vector<4x8xf32>
    %32 = vector.multi_reduction <add>, %31, %cst_9 [2] : vector<4x8x8xf32> to vector<4x8xf32>
    %33 = vector.shape_cast %32 : vector<4x8xf32> to vector<4x8x1xf32>
    %34 = vector.broadcast %33 : vector<4x8x1xf32> to vector<4x8x8xf32>
    %35 = arith.divf %31, %34 : vector<4x8x8xf32>
    "tpu.trace_start"() <{level = 10 : i32, message = "bqk,bkd->bqd"}> : () -> ()
    %cst_10 = arith.constant dense<0.000000e+00> : vector<4x8x8xf32>
    %36 = tpu.matmul %35, %25, %cst_10 {dimension_numbers = #tpu.dot_dimension_numbers<[2], [1], [1], [2], [0, 0, 0, 1, 1, 2], [0], [0]>} : vector<4x8x8xf32>, vector<4x8x8xf32>, vector<4x8x8xf32> -> vector<4x8x8xf32>
    "tpu.trace_stop"() : () -> ()
    %37 = vector.extract_strided_slice %2 {offsets = [0, 16], sizes = [32, 8], strides = [1, 1]} : vector<32x96xf32> to vector<32x8xf32>
    %38 = vector.shape_cast %37 : vector<32x8xf32> to vector<4x8x8xf32>
    %39 = vector.extract_strided_slice %2 {offsets = [0, 48], sizes = [32, 8], strides = [1, 1]} : vector<32x96xf32> to vector<32x8xf32>
    %40 = vector.shape_cast %39 : vector<32x8xf32> to vector<4x8x8xf32>
    %41 = vector.extract_strided_slice %2 {offsets = [0, 80], sizes = [32, 8], strides = [1, 1]} : vector<32x96xf32> to vector<32x8xf32>
    %42 = vector.shape_cast %41 : vector<32x8xf32> to vector<4x8x8xf32>
    "tpu.trace_start"() <{level = 10 : i32, message = "bqd,bkd->bqk"}> : () -> ()
    %cst_11 = arith.constant dense<0.000000e+00> : vector<4x8x8xf32>
    %43 = tpu.matmul %38, %40, %cst_11 {dimension_numbers = #tpu.dot_dimension_numbers<[2], [2], [1], [1], [0, 0, 0, 1, 1, 1], [0], [0]>} : vector<4x8x8xf32>, vector<4x8x8xf32>, vector<4x8x8xf32> -> vector<4x8x8xf32>
    "tpu.trace_stop"() : () -> ()
    %cst_12 = arith.constant dense<0xFF800000> : vector<4x8xf32>
    %44 = vector.multi_reduction <maximumf>, %43, %cst_12 [2] : vector<4x8x8xf32> to vector<4x8xf32>
    %45 = vector.shape_cast %44 : vector<4x8xf32> to vector<4x8x1xf32>
    %46 = vector.broadcast %45 : vector<4x8x1xf32> to vector<4x8x8xf32>
    %47 = arith.subf %43, %46 : vector<4x8x8xf32>
    %48 = math.exp %47 : vector<4x8x8xf32>
    %cst_13 = arith.constant dense<0.000000e+00> : vector<4x8xf32>
    %49 = vector.multi_reduction <add>, %48, %cst_13 [2] : vector<4x8x8xf32> to vector<4x8xf32>
    %50 = vector.shape_cast %49 : vector<4x8xf32> to vector<4x8x1xf32>
    %51 = vector.broadcast %50 : vector<4x8x1xf32> to vector<4x8x8xf32>
    %52 = arith.divf %48, %51 : vector<4x8x8xf32>
    "tpu.trace_start"() <{level = 10 : i32, message = "bqk,bkd->bqd"}> : () -> ()
    %cst_14 = arith.constant dense<0.000000e+00> : vector<4x8x8xf32>
    %53 = tpu.matmul %52, %42, %cst_14 {dimension_numbers = #tpu.dot_dimension_numbers<[2], [1], [1], [2], [0, 0, 0, 1, 1, 2], [0], [0]>} : vector<4x8x8xf32>, vector<4x8x8xf32>, vector<4x8x8xf32> -> vector<4x8x8xf32>
    "tpu.trace_stop"() : () -> ()
    %54 = vector.extract_strided_slice %2 {offsets = [0, 24], sizes = [32, 8], strides = [1, 1]} : vector<32x96xf32> to vector<32x8xf32>
    %55 = vector.shape_cast %54 : vector<32x8xf32> to vector<4x8x8xf32>
    %56 = vector.extract_strided_slice %2 {offsets = [0, 56], sizes = [32, 8], strides = [1, 1]} : vector<32x96xf32> to vector<32x8xf32>
    %57 = vector.shape_cast %56 : vector<32x8xf32> to vector<4x8x8xf32>
    %58 = vector.extract_strided_slice %2 {offsets = [0, 88], sizes = [32, 8], strides = [1, 1]} : vector<32x96xf32> to vector<32x8xf32>
    %59 = vector.shape_cast %58 : vector<32x8xf32> to vector<4x8x8xf32>
    "tpu.trace_start"() <{level = 10 : i32, message = "bqd,bkd->bqk"}> : () -> ()
    %cst_15 = arith.constant dense<0.000000e+00> : vector<4x8x8xf32>
    %60 = tpu.matmul %55, %57, %cst_15 {dimension_numbers = #tpu.dot_dimension_numbers<[2], [2], [1], [1], [0, 0, 0, 1, 1, 1], [0], [0]>} : vector<4x8x8xf32>, vector<4x8x8xf32>, vector<4x8x8xf32> -> vector<4x8x8xf32>
    "tpu.trace_stop"() : () -> ()
    %cst_16 = arith.constant dense<0xFF800000> : vector<4x8xf32>
    %61 = vector.multi_reduction <maximumf>, %60, %cst_16 [2] : vector<4x8x8xf32> to vector<4x8xf32>
    %62 = vector.shape_cast %61 : vector<4x8xf32> to vector<4x8x1xf32>
    %63 = vector.broadcast %62 : vector<4x8x1xf32> to vector<4x8x8xf32>
    %64 = arith.subf %60, %63 : vector<4x8x8xf32>
    %65 = math.exp %64 : vector<4x8x8xf32>
    %cst_17 = arith.constant dense<0.000000e+00> : vector<4x8xf32>
    %66 = vector.multi_reduction <add>, %65, %cst_17 [2] : vector<4x8x8xf32> to vector<4x8xf32>
    %67 = vector.shape_cast %66 : vector<4x8xf32> to vector<4x8x1xf32>
    %68 = vector.broadcast %67 : vector<4x8x1xf32> to vector<4x8x8xf32>
    %69 = arith.divf %65, %68 : vector<4x8x8xf32>
    "tpu.trace_start"() <{level = 10 : i32, message = "bqk,bkd->bqd"}> : () -> ()
    %cst_18 = arith.constant dense<0.000000e+00> : vector<4x8x8xf32>
    %70 = tpu.matmul %69, %59, %cst_18 {dimension_numbers = #tpu.dot_dimension_numbers<[2], [1], [1], [2], [0, 0, 0, 1, 1, 2], [0], [0]>} : vector<4x8x8xf32>, vector<4x8x8xf32>, vector<4x8x8xf32> -> vector<4x8x8xf32>
    "tpu.trace_stop"() : () -> ()
    %71 = tpu.concatenate %19, %36, %53, %70 in 2 : vector<4x8x8xf32>, vector<4x8x8xf32>, vector<4x8x8xf32>, vector<4x8x8xf32> -> vector<4x8x32xf32>
    %72 = vector.shape_cast %71 : vector<4x8x32xf32> to vector<32x32xf32>
    %c0_19 = arith.constant 0 : index
    %c0_20 = arith.constant 0 : index
    %73 = vector.load %arg3[%c0_19, %c0_20] : memref<32x32xf32, #tpu.memory_space<vmem>>, vector<32x32xf32>
    %cst_21 = arith.constant dense<0.000000e+00> : vector<32x32xf32>
    %74 = tpu.matmul %72, %73, %cst_21 {dimension_numbers = #tpu.dot_dimension_numbers<[1], [0], [0], [1], [0, 0, 1, 1], [], []>} : vector<32x32xf32>, vector<32x32xf32>, vector<32x32xf32> -> vector<32x32xf32>
    %c0_22 = arith.constant 0 : index
    %c0_23 = arith.constant 0 : index
    %75 = vector.load %arg4[%c0_22, %c0_23] : memref<1x32xf32, #tpu.memory_space<vmem>>, vector<1x32xf32>
    %76 = vector.broadcast %75 : vector<1x32xf32> to vector<32x32xf32>
    %77 = arith.addf %74, %76 : vector<32x32xf32>
    %78 = arith.addf %0, %77 : vector<32x32xf32>
    %cst_24 = arith.constant dense<0.000000e+00> : vector<32xf32>
    %79 = vector.multi_reduction <add>, %78, %cst_24 [1] : vector<32x32xf32> to vector<32xf32>
    %80 = vector.shape_cast %79 : vector<32xf32> to vector<32x1xf32>
    %cst_25 = arith.constant 3.200000e+01 : f32
    %81 = vector.broadcast %cst_25 : f32 to vector<32x1xf32>
    %82 = arith.divf %80, %81 : vector<32x1xf32>
    %83 = vector.broadcast %82 : vector<32x1xf32> to vector<32x32xf32>
    %84 = arith.subf %78, %83 : vector<32x32xf32>
    %85 = arith.mulf %84, %84 : vector<32x32xf32>
    %cst_26 = arith.constant dense<0.000000e+00> : vector<32xf32>
    %86 = vector.multi_reduction <add>, %85, %cst_26 [1] : vector<32x32xf32> to vector<32xf32>
    %87 = vector.shape_cast %86 : vector<32xf32> to vector<32x1xf32>
    %cst_27 = arith.constant 3.200000e+01 : f32
    %88 = vector.broadcast %cst_27 : f32 to vector<32x1xf32>
    %89 = arith.divf %87, %88 : vector<32x1xf32>
    %90 = vector.broadcast %82 : vector<32x1xf32> to vector<32x32xf32>
    %91 = arith.subf %78, %90 : vector<32x32xf32>
    %cst_28 = arith.constant 9.99999974E-6 : f32
    %92 = vector.broadcast %cst_28 : f32 to vector<32x1xf32>
    %93 = arith.addf %89, %92 : vector<32x1xf32>
    %94 = math.rsqrt %93 : vector<32x1xf32>
    %95 = vector.broadcast %94 : vector<32x1xf32> to vector<32x32xf32>
    %96 = arith.mulf %91, %95 : vector<32x32xf32>
    %c0_29 = arith.constant 0 : index
    %c0_30 = arith.constant 0 : index
    %97 = vector.load %arg5[%c0_29, %c0_30] : memref<1x32xf32, #tpu.memory_space<vmem>>, vector<1x32xf32>
    %98 = vector.broadcast %97 : vector<1x32xf32> to vector<32x32xf32>
    %99 = arith.mulf %96, %98 : vector<32x32xf32>
    %c0_31 = arith.constant 0 : index
    %c0_32 = arith.constant 0 : index
    %100 = vector.load %arg6[%c0_31, %c0_32] : memref<1x32xf32, #tpu.memory_space<vmem>>, vector<1x32xf32>
    %101 = vector.broadcast %100 : vector<1x32xf32> to vector<32x32xf32>
    %102 = arith.addf %99, %101 : vector<32x32xf32>
    %c0_33 = arith.constant 0 : index
    %c0_34 = arith.constant 0 : index
    %103 = vector.load %arg7[%c0_33, %c0_34] : memref<32x32xf32, #tpu.memory_space<vmem>>, vector<32x32xf32>
    tpu.vector_store %arg7[%c0_33, %c0_34], %102 {strides = array<i32>} : memref<32x32xf32, #tpu.memory_space<vmem>>, vector<32x32xf32>,
    return
  }
  func.func @transform_0(%arg0: i32) -> (i32, i32) {
    %c0_i32 = arith.constant 0 : i32
    %c0_i32_0 = arith.constant 0 : i32
    return %arg0, %c0_i32 : i32, i32
  }
  func.func @transform_1(%arg0: i32) -> (i32, i32) {
    %c0_i32 = arith.constant 0 : i32
    %c0_i32_0 = arith.constant 0 : i32
    %c0_i32_1 = arith.constant 0 : i32
    return %c0_i32, %c0_i32_0 : i32, i32
  }
  func.func @transform_2(%arg0: i32) -> (i32, i32) {
    %c0_i32 = arith.constant 0 : i32
    %c0_i32_0 = arith.constant 0 : i32
    %c0_i32_1 = arith.constant 0 : i32
    return %c0_i32, %c0_i32_0 : i32, i32
  }
  func.func @transform_3(%arg0: i32) -> (i32, i32) {
    %c0_i32 = arith.constant 0 : i32
    %c0_i32_0 = arith.constant 0 : i32
    %c0_i32_1 = arith.constant 0 : i32
    return %c0_i32, %c0_i32_0 : i32, i32
  }
  func.func @transform_4(%arg0: i32) -> (i32, i32) {
    %c0_i32 = arith.constant 0 : i32
    %c0_i32_0 = arith.constant 0 : i32
    %c0_i32_1 = arith.constant 0 : i32
    return %c0_i32, %c0_i32_0 : i32, i32
  }
  func.func @transform_5(%arg0: i32) -> (i32, i32) {
    %c0_i32 = arith.constant 0 : i32
    %c0_i32_0 = arith.constant 0 : i32
    %c0_i32_1 = arith.constant 0 : i32
    return %c0_i32, %c0_i32_0 : i32, i32
  }
  func.func @transform_6(%arg0: i32) -> (i32, i32) {
    %c0_i32 = arith.constant 0 : i32
    %c0_i32_0 = arith.constant 0 : i32
    return %arg0, %c0_i32 : i32, i32
  }
}

</mosaic_0001>

<bundles_post_ra>
// kernel: tpu_custom_call.1
= control target key start
LH: loop header
LB: loop body
LE: loop exit
PB: predicated region body
PF: predicated region fallthrough
CT: control target
= control target key end

     0   :  { %11 = vsyncpa [#allocation3], 0  ;;  %s4063_s0 = inlined_call_operand.hbm [shape: f32[32,32], index: 0, kind: input, shape index: {}]   ;;  %s4064_s1 = inlined_call_operand.hbm [shape: f32[32,96], index: 1, kind: input, shape index: {}]   ;;  %s4065_s2 = inlined_call_operand.hbm [shape: f32[32,32], index: 2, kind: input, shape index: {}]   ;;  %s4066_s3 = inlined_call_operand.vmem [shape: f32[1,32], index: 3, kind: input, shape index: {}]   ;;  %s4067_s4 = inlined_call_operand.vmem [shape: f32[1,32], index: 4, kind: input, shape index: {}]   ;;  %s4068_s5 = inlined_call_operand.vmem [shape: f32[1,32], index: 5, kind: input, shape index: {}]   ;;  %s4069_s6 = inlined_call_operand.hbm [shape: f32[32,32], index: 6, kind: output, shape index: {}]  }
   0x1   :  { %12 = vsyncpa [#allocation6], 0 }
   0x2   :  { %13 = vsyncpa [#allocation4], 0  ;;  %s3613_s21 = smov [#allocation5]   ;;  %s3614_s23 = smov [#allocation2]  }
   0x3   :  { %s31_s22 = sshll.u32 %s3613_s21, 4  ;;  %s19_s24 = sshll.u32 %s3614_s23, 4  ;;  %s32_s22 = int_to_ptr.vmem [resolvable:$true] %s31_s22  ;;  %s3669_s24 = int_to_ptr.vmem [resolvable:$true] %s19_s24 }
   0x4   :  { %s3519_s27 = scalar_lea.hbm %s4064_s1, 512 }
   0x5   :  { %p3520_p0 = scmp.ne.s32.totalorder %s4064_s1, %s3519_s27  ;;  %p3523_p1 = scmp.lt.u32.totalorder %s3519_s27, %s4064_s1 }
   0x7   :  { %p3525_p2 = pnand %p3523_p1, %p3520_p0 }
   0x9   :  { %3528 = shalt.err (!%p3525_p2)
}
   0xa   :  { %s3529_s8 = scalar_lea.vmem %s32_s22, 512  ;;  %p3534_p4 = scmp.lt.s32.totalorder %s32_s22, %s32_s22 }
   0xb   :  { %p3530_p3 = scmp.ne.s32.totalorder %s32_s22, %s3529_s8  ;;  %p3535_p5 = scmp.lt.s32.totalorder %s3529_s8, %s3529_s8 }
   0xd   :  { %p3536_p6 = por %p3535_p5, %p3534_p4 }
   0xf   :  { %p3537_p7 = pnand %p3536_p6, %p3530_p3 }
  0x11   :  { %3540 = shalt.err (!%p3537_p7)
}
  0x12   :  { %s3615_s9 = smov 128   ;;  %s3616_s10 = smov 8  }
  0x13   :  { %37 = dma.hbm_to_vmem [thread:$0]  %s4064_s1, 512, %s32_s22, [#allocation6], %s3615_s9, %s3615_s9, %s3616_s10  }
  0x14   :  { %s3541_s15 = scalar_lea.hbm %s4063_s0, 512 }
  0x15   :  { %p3542_p8 = scmp.ne.s32.totalorder %s4063_s0, %s3541_s15  ;;  %p3545_p9 = scmp.lt.u32.totalorder %s3541_s15, %s4063_s0 }
  0x17   :  { %p3547_p10 = pnand %p3545_p9, %p3542_p8 }
  0x19   :  { %3550 = shalt.err (!%p3547_p10)
}
  0x1a   :  { %s3551_s20 = scalar_lea.vmem %s3669_s24, 512  ;;  %p3556_p12 = scmp.lt.s32.totalorder %s3669_s24, %s3669_s24 }
  0x1b   :  { %p3552_p11 = scmp.ne.s32.totalorder %s3669_s24, %s3551_s20  ;;  %p3557_p13 = scmp.lt.s32.totalorder %s3551_s20, %s3551_s20 }
  0x1d   :  { %p3558_p0 = por %p3557_p13, %p3556_p12 }
  0x1f   :  { %p3559_p1 = pnand %p3558_p0, %p3552_p11 }
  0x21   :  { %3562 = shalt.err (!%p3559_p1)
}
  0x22   :  { %25 = dma.hbm_to_vmem [thread:$0]  %s4063_s0, 512, %s3669_s24, [#allocation3], %s3615_s9, %s3615_s9, %s3616_s10  }
  0x23   :  { %s3617_s22 = smov [#allocation7]   ;;  %s3563_s27 = scalar_lea.hbm %s4065_s2, 512 }
  0x24   :  { %s43_s23 = sshll.u32 %s3617_s22, 4  ;;  %p3564_p2 = scmp.ne.s32.totalorder %s4065_s2, %s3563_s27  ;;  %s44_s23 = int_to_ptr.vmem [resolvable:$true] %s43_s23 }
  0x25   :  { %p3567_p3 = scmp.lt.u32.totalorder %s3563_s27, %s4065_s2 }
  0x27   :  { %p3569_p4 = pnand %p3567_p3, %p3564_p2 }
  0x29   :  { %3572 = shalt.err (!%p3569_p4)
}
  0x2a   :  { %s3573_s8 = scalar_lea.vmem %s44_s23, 512  ;;  %p3578_p6 = scmp.lt.s32.totalorder %s44_s23, %s44_s23 }
  0x2b   :  { %p3574_p5 = scmp.ne.s32.totalorder %s44_s23, %s3573_s8  ;;  %p3579_p7 = scmp.lt.s32.totalorder %s3573_s8, %s3573_s8 }
  0x2d   :  { %p3580_p8 = por %p3579_p7, %p3578_p6 }
  0x2f   :  { %p3581_p9 = pnand %p3580_p8, %p3574_p5 }
  0x31   :  { %3584 = shalt.err (!%p3581_p9)
}
  0x32   :  { %49 = dma.hbm_to_vmem [thread:$0]  %s4065_s2, 512, %s44_s23, [#allocation6], %s3615_s9, %s3615_s9, %s3616_s10  }
  0x33   :  { %3607 = dma.done.wait [#allocation3], 512  }
  0x34   :  { %3608 = vsyncadd [#allocation3], 4294966784 }
  0x35   :  { %3609 = dma.done.wait [#allocation6], 1024  }
  0x36   :  { %3610 = vsyncadd [#allocation6], 4294966272  ;;  %vm73_vm0 = vcmask 261120   ;;  %v69_v0 = vld [vmem:[#allocation5] sm:$0xff]  ;;  %v70_v1 = vld [vmem:[#allocation5 + $0x8] sm:$0xff]  ;;  %v3618_v10 = vmov 0.0  }
  0x37   :  { %v71_v2 = vld [vmem:[#allocation5 + $0x10] sm:$0xff]  ;;  %v3406_v3 = vpack.c.bf16 %v70_v1, %v69_v0  ;;  %v72_v4 = vld [vmem:[#allocation5 + $0x18] sm:$0xff]  ;;  %v65_v5 = vld [vmem:[#allocation2] sm:$0xff]  ;;  %3237 = vmatprep.subr.mxu1 %v3618_v10  ;;  %vm3619_vm1 = vmmov 0   ;;  %s3620_s2 = smov 96   ;;  %vm174_vm2 = vcmask 64512  }
  0x38   :  { %v3410_v6 = vpack.c.bf16 %v72_v4, %v71_v2  ;;  %3226 = vmatprep.mubr.msk.f32.mxu0 %vm73_vm0, %v65_v5  ;;  %v66_v7 = vld [vmem:[#allocation2 + $0x8] sm:$0xff]  ;;  %v67_v8 = vld [vmem:[#allocation2 + $0x10] sm:$0xff]  ;;  %v68_v9 = vld [vmem:[#allocation2 + $0x18] sm:$0xff]  ;;  %3239 = vmatprep.mubr.msk.f32.mxu1 %vm3619_vm1, %v3618_v10  ;;  %s3621_s11 = smov 64   ;;  %s3622_s12 = smov 88   ;;  %vm2860_vm3 = vcmask 130048  }
  0x39   :  { %3407 = vmatprep.subr.bf16.mxu0 %v3406_v3  ;;  %s3623_s13 = smov 120   ;;  %s3624_s14 = smov 56   ;;  %vm2865_vm4 = vcmask 195584  }
  0x3a   :  { %3409 = vmatpush3.bf16.msra.mxu0 %v3406_v3  ;;  %s3625_s15 = smov 80   ;;  %s3626_s16 = smov 112  }
  0x3b   :  { %3411 = vmatprep.subr.bf16.mxu0 %v3410_v6  ;;  %s3627_s17 = smov 48   ;;  %s3628_s18 = smov 72  }
  0x3c   :  { %s3629_s19 = smov 104   ;;  %s3630_s20 = smov 40  }
  0x3d   :  { %s3631_s1 = smov 16   ;;  %s3632_s21 = smov 24  }
  0x3e   :  { %3413 = vmatpush3.bf16.msra.mxu0 %v3410_v6 }
  0x3f   :  { %3232 = vmatprep.subr.mxu0 %v3618_v10 }
  0x41   :  { %3227 = vmatmul.mubr.msk.f32.vlgmr.msra.gmra.mrb[0].mxu0 %vm73_vm0, %v66_v7 }
  0x42   :  { %3229 = vmatprep.mubr.msk.f32.mxu0 %vm73_vm0, %v67_v8 }
  0x45   :  { %3230 = vmatmul.mubr.msk.f32.gmra.mrb[2].mxu0 %vm73_vm0, %v68_v9 }
  0x46   :  { %3234 = vmatprep.mubr.msk.f32.mxu0 %vm3619_vm1, %v3618_v10 }
 0x114   :  { %v3731_v11 = vpop.f32.mrb[0].mxu0 }
 0x115   :  { %v3733_v12 = vpop.f32.mrb[1].mxu0 }
 0x116   :  { %172 = vrot.lane.b32.xlu0 %v3733_v12, %s3620_s2 }
 0x118   :  { %v3736_v13 = vpop.f32.mrb[2].mxu0 }
 0x119   :  { %v3738_v14 = vpop.f32.mrb[3].mxu0 }
 0x11a   :  { %250 = vrot.lane.b32.xlu0 %v3731_v11, %s3620_s2  ;;  %327 = vrot.lane.b32.xlu1 %v3738_v14, %s3620_s2 }
 0x11e   :  { %404 = vrot.lane.b32.xlu1 %v3736_v13, %s3620_s2 }
 0x188   :  { %v173_v15 = vpop.permute.xlu0 %172 }
 0x189   :  { %3233 = vmatpush3.xpose.msk.msra.mxu0 %vm174_vm2, %v173_v15 }
 0x18a   :  { %3247 = vmatprep.subr.mxu0 %v3618_v10 }
 0x18c   :  { %3235 = vmatmul.mubr.msk.f32.vlgmr.msra.gmra.mrb[4].mxu0 %vm174_vm2, %v3733_v12  ;;  %v251_v16 = vpop.permute.xlu0 %250  ;;  %v328_v17 = vpop.permute.xlu1 %327 }
 0x18d   :  { %3238 = vmatpush3.xpose.msk.msra.mxu1 %vm174_vm2, %v251_v16  ;;  %3249 = vmatprep.mubr.msk.f32.mxu0 %vm3619_vm1, %v3618_v10 }
 0x18e   :  { %3242 = vmatprep.subr.mxu1 %v3618_v10 }
 0x190   :  { %3240 = vmatmul.mubr.msk.f32.vlgmr.msra.gmra.mrb[0].mxu1 %vm174_vm2, %v3731_v11  ;;  %v405_v18 = vpop.permute.xlu1 %404 }
 0x191   :  { %3243 = vmatpush3.xpose.msk.msra.mxu1 %vm174_vm2, %v328_v17  ;;  %3248 = vmatpush3.xpose.msk.msra.mxu0 %vm174_vm2, %v405_v18 }
 0x192   :  { %3244 = vmatprep.mubr.msk.f32.mxu1 %vm3619_vm1, %v3618_v10  ;;  %3252 = vmatprep.subr.mxu1 %v3618_v10 }
 0x193   :  { %3257 = vmatprep.subr.mxu0 %v3618_v10 }
 0x194   :  { %3245 = vmatmul.mubr.msk.f32.vlgmr.msra.gmra.mrb[2].mxu1 %vm174_vm2, %v3738_v14  ;;  %3250 = vmatmul.mubr.msk.f32.vlgmr.msra.gmra.mrb[6].mxu0 %vm174_vm2, %v3736_v13 }
 0x195   :  { %3254 = vmatprep.mubr.msk.f32.mxu1 %vm3619_vm1, %v3618_v10  ;;  %3259 = vmatprep.mubr.msk.f32.mxu0 %vm3619_vm1, %v3618_v10 }
 0x25f   :  { %v245_v19 = vpop.f32.mrb[4].mxu0 }
 0x260   :  { %v3236_v20 = vpop.f32.mrb[5].mxu0  ;;  %v480_v21 = vsel %vm174_vm2, %v245_v19, -inf }
 0x261   :  { %481 = vmax.xlane.f32.xlu0 %v480_v21 }
 0x263   :  { %v322_v22 = vpop.f32.mrb[0].mxu1 }
 0x264   :  { %v3241_v23 = vpop.f32.mrb[1].mxu1  ;;  %v483_v24 = vsel %vm174_vm2, %v322_v22, -inf }
 0x265   :  { %484 = vmax.xlane.f32.xlu1 %v483_v24 }
 0x267   :  { %v399_v25 = vpop.f32.mrb[2].mxu1  ;;  %v476_v26 = vpop.f32.mrb[6].mxu0 }
 0x268   :  { %v3246_v27 = vpop.f32.mrb[3].mxu1  ;;  %v3251_v28 = vpop.f32.mrb[7].mxu0  ;;  %v486_v29 = vsel %vm174_vm2, %v399_v25, -inf  ;;  %v489_v30 = vsel %vm174_vm2, %v476_v26, -inf }
 0x269   :  { %487 = vmax.xlane.f32.xlu0 %v486_v29 }
 0x26d   :  { %490 = vmax.xlane.f32.xlu0 %v489_v30 }
 0x276   :  { %524 = vrot.lane.b32.xlu1 %v3733_v12, %s3621_s11 }
 0x27a   :  { %676 = vrot.lane.b32.xlu1 %v3738_v14, %s3621_s11 }
 0x27e   :  { %752 = vrot.lane.b32.xlu1 %v3736_v13, %s3621_s11 }
 0x282   :  { %908 = vrot.lane.b32.xlu1 %v3731_v11, %s3622_s12 }
 0x283   :  { %600 = vrot.lane.b32.xlu0 %v3731_v11, %s3621_s11 }
 0x287   :  { %830 = vrot.lane.b32.xlu0 %v3733_v12, %s3622_s12 }
 0x2ee   :  { %v482_v31 = vpop.xlane.xlu0 %481 }
 0x2ef   :  { %v492_v32 = vsub.f32 %v245_v19, %v482_v31 }
 0x2f1   :  { %v496_v33 = vmul.f32 1.442695, %v492_v32 }
 0x2f2   :  { %v485_v34 = vpop.xlane.xlu1 %484 }
 0x2f3   :  { %3443 = vpow2.f32 %v496_v33  ;;  %v493_v35 = vsub.f32 %v322_v22, %v485_v34 }
 0x2f5   :  { %v498_v36 = vmul.f32 1.442695, %v493_v35 }
 0x2f6   :  { %v525_v37 = vpop.permute.xlu1 %524  ;;  %v488_v38 = vpop.xlane.xlu0 %487 }
 0x2f7   :  { %3445 = vpow2.f32 %v498_v36  ;;  %v494_v39 = vsub.f32 %v399_v25, %v488_v38  ;;  %3253 = vmatpush3.msra.mxu1 %v525_v37 }
 0x2f8   :  { %3262 = vmatprep.subr.mxu1 %v3618_v10 }
 0x2f9   :  { %v500_v40 = vmul.f32 1.442695, %v494_v39 }
 0x2fa   :  { %v491_v41 = vpop.xlane.xlu0 %490  ;;  %v677_v53 = vpop.permute.xlu1 %676 }
 0x2fb   :  { %3447 = vpow2.f32 %v500_v40  ;;  %v495_v42 = vsub.f32 %v476_v26, %v491_v41 }
 0x2fd   :  { %v3444_v43 = vpop.eup %3443  ;;  %v502_v44 = vmul.f32 1.442695, %v495_v42 }
 0x2fe   :  { %v601_v45 = vpop.permute.xlu0 %600  ;;  %v504_v46 = vsel %vm174_vm2, %v3444_v43, 0.0  ;;  %v753_v54 = vpop.permute.xlu1 %752 }
 0x2ff   :  { %3449 = vpow2.f32 %v502_v44  ;;  %505 = vadd.xlane.f32.xlu1 %v504_v46  ;;  %3258 = vmatpush3.msra.mxu0 %v601_v45 }
 0x300   :  { %3267 = vmatprep.subr.mxu0 %v3618_v10 }
 0x301   :  { %v3446_v47 = vpop.eup %3445 }
 0x302   :  { %v507_v48 = vsel %vm174_vm2, %v3446_v47, 0.0  ;;  %v909_v55 = vpop.permute.xlu1 %908  ;;  %v831_v56 = vpop.permute.xlu0 %830 }
 0x303   :  { %508 = vadd.xlane.f32.xlu0 %v507_v48 }
 0x305   :  { %v3448_v49 = vpop.eup %3447 }
 0x306   :  { %v510_v50 = vsel %vm174_vm2, %v3448_v49, 0.0 }
 0x307   :  { %511 = vadd.xlane.f32.xlu1 %v510_v50 }
 0x309   :  { %v3450_v51 = vpop.eup %3449 }
 0x30a   :  { %v513_v52 = vsel %vm174_vm2, %v3450_v51, 0.0 }
 0x30b   :  { %514 = vadd.xlane.f32.xlu0 %v513_v52 }
 0x318   :  { %906 = vrot.lane.b32.xlu1 %v3731_v11, %s3623_s13 }
 0x31c   :  { %1064 = vrot.lane.b32.xlu1 %v3736_v13, %s3622_s12 }
 0x320   :  { %1062 = vrot.lane.b32.xlu1 %v3736_v13, %s3623_s13 }
 0x321   :  { %828 = vrot.lane.b32.xlu0 %v3733_v12, %s3623_s13 }
 0x325   :  { %986 = vrot.lane.b32.xlu0 %v3738_v14, %s3622_s12 }
 0x329   :  { %984 = vrot.lane.b32.xlu0 %v3738_v14, %s3623_s13 }
 0x38c   :  { %v506_v57 = vpop.xlane.xlu1 %505 }
 0x38d   :  { %3451 = vrcp.f32 %v506_v57 }
 0x390   :  { %v509_v58 = vpop.xlane.xlu0 %508 }
 0x391   :  { %3453 = vrcp.f32 %v509_v58 }
 0x394   :  { %v512_v59 = vpop.xlane.xlu1 %511 }
 0x395   :  { %3455 = vrcp.f32 %v512_v59 }
 0x397   :  { %v3452_v60 = vpop.eup %3451 }
 0x398   :  { %v517_v61 = vmul.f32 %v3452_v60, %v3444_v43  ;;  %v515_v62 = vpop.xlane.xlu0 %514  ;;  %v907_v4 = vpop.permute.xlu1 %906 }
 0x399   :  { %3457 = vrcp.f32 %v515_v62 }
 0x39a   :  { %3255 = vmatmul.mubr.msk.f32.vlgmr.msra.gmra.mrb[4].mxu1 %vm174_vm2, %v517_v61 }
 0x39b   :  { %v3454_v63 = vpop.eup %3453  ;;  %3263 = vmatpush3.msra.mxu1 %v677_v53  ;;  %3264 = vmatprep.mubr.msk.f32.mxu1 %vm3619_vm1, %v3618_v10 }
 0x39c   :  { %v519_v0 = vmul.f32 %v3454_v63, %v3446_v47  ;;  %3272 = vmatprep.subr.mxu1 %v3618_v10  ;;  %v829_v1 = vpop.permute.xlu0 %828  ;;  %v1065_v8 = vpop.permute.xlu1 %1064 }
 0x39e   :  { %3260 = vmatmul.mubr.msk.f32.vlgmr.msra.gmra.mrb[8].mxu0 %vm174_vm2, %v519_v0 }
 0x39f   :  { %v3456_v2 = vpop.eup %3455  ;;  %3268 = vmatpush3.msra.mxu0 %v753_v54  ;;  %3269 = vmatprep.mubr.msk.f32.mxu0 %vm3619_vm1, %v3618_v10 }
 0x3a0   :  { %v521_v3 = vmul.f32 %v3456_v2, %v3448_v49  ;;  %3277 = vmatprep.subr.mxu0 %v3618_v10  ;;  %v987_v6 = vpop.permute.xlu0 %986  ;;  %v1063_v15 = vpop.permute.xlu1 %1062 }
 0x3a2   :  { %3265 = vmatmul.mubr.msk.f32.vlgmr.msra.gmra.mrb[6].mxu1 %vm174_vm2, %v521_v3 }
 0x3a3   :  { %v3458_v5 = vpop.eup %3457  ;;  %3273 = vmatpush3.xpose.msk.msra.mxu1 %vm174_vm2, %v831_v56  ;;  %3274 = vmatprep.mubr.msk.f32.mxu1 %vm3619_vm1, %v3618_v10 }
 0x3a4   :  { %v523_v7 = vmul.f32 %v3458_v5, %v3450_v51  ;;  %3282 = vmatprep.subr.mxu1 %v3618_v10  ;;  %v985_v9 = vpop.permute.xlu0 %984 }
 0x3a6   :  { %3270 = vmatmul.mubr.msk.f32.vlgmr.msra.gmra.mrb[10].mxu0 %vm174_vm2, %v523_v7  ;;  %3275 = vmatmul.mubr.msk.f32.vlgmr.msra.gmra.mrb[8].mxu1 %vm174_vm2, %v829_v1 }
 0x3a7   :  { %3278 = vmatpush3.xpose.msk.msra.mxu0 %vm174_vm2, %v909_v55  ;;  %3283 = vmatpush3.xpose.msk.msra.mxu1 %vm174_vm2, %v987_v6 }
 0x3a8   :  { %3279 = vmatprep.mubr.msk.f32.mxu0 %vm3619_vm1, %v3618_v10  ;;  %3284 = vmatprep.mubr.msk.f32.mxu1 %vm3619_vm1, %v3618_v10 }
 0x3a9   :  { %3287 = vmatprep.subr.mxu0 %v3618_v10  ;;  %3292 = vmatprep.subr.mxu1 %v3618_v10 }
 0x3aa   :  { %3280 = vmatmul.mubr.msk.f32.vlgmr.msra.gmra.mrb[12].mxu0 %vm174_vm2, %v907_v4  ;;  %3285 = vmatmul.mubr.msk.f32.vlgmr.msra.gmra.mrb[10].mxu1 %vm174_vm2, %v985_v9 }
 0x3ab   :  { %3288 = vmatpush3.xpose.msk.msra.mxu0 %vm174_vm2, %v1065_v8  ;;  %3289 = vmatprep.mubr.msk.f32.mxu0 %vm3619_vm1, %v3618_v10 }
 0x3ac   :  { %3297 = vmatprep.subr.mxu0 %v3618_v10  ;;  %3294 = vmatprep.mubr.msk.f32.mxu1 %vm3619_vm1, %v3618_v10 }
 0x3ae   :  { %3290 = vmatmul.mubr.msk.f32.vlgmr.msra.gmra.mrb[14].mxu0 %vm174_vm2, %v1063_v15 }
 0x3af   :  { %3299 = vmatprep.mubr.msk.f32.mxu0 %vm3619_vm1, %v3618_v10 }
 0x46d   :  { %v3827_v16 = vpop.f32.mrb[4].mxu1 }
 0x46e   :  { %v3256_v17 = vpop.f32.mrb[5].mxu1 }
 0x471   :  { %v3829_v18 = vpop.f32.mrb[8].mxu0 }
 0x472   :  { %v3261_v19 = vpop.f32.mrb[9].mxu0 }
 0x475   :  { %v3831_v20 = vpop.f32.mrb[6].mxu1 }
 0x476   :  { %v3266_v21 = vpop.f32.mrb[7].mxu1 }
 0x479   :  { %v3833_v22 = vpop.f32.mrb[10].mxu0  ;;  %v902_v23 = vpop.f32.mrb[8].mxu1 }
 0x47a   :  { %v3271_v24 = vpop.f32.mrb[11].mxu0  ;;  %v3276_v25 = vpop.f32.mrb[9].mxu1  ;;  %v1140_v26 = vsel %vm174_vm2, %v902_v23, -inf }
 0x47b   :  { %1141 = vmax.xlane.f32.xlu0 %v1140_v26 }
 0x47d   :  { %v980_v27 = vpop.f32.mrb[12].mxu0  ;;  %v1058_v28 = vpop.f32.mrb[10].mxu1 }
 0x47e   :  { %v3281_v29 = vpop.f32.mrb[13].mxu0  ;;  %v3286_v30 = vpop.f32.mrb[11].mxu1  ;;  %v1146_v31 = vsel %vm174_vm2, %v1058_v28, -inf  ;;  %v1143_v32 = vsel %vm174_vm2, %v980_v27, -inf }
 0x47f   :  { %1147 = vmax.xlane.f32.xlu0 %v1146_v31  ;;  %1144 = vmax.xlane.f32.xlu1 %v1143_v32 }
 0x481   :  { %v1136_v33 = vpop.f32.mrb[14].mxu0 }
 0x482   :  { %v3291_v34 = vpop.f32.mrb[15].mxu0  ;;  %v1149_v35 = vsel %vm174_vm2, %v1136_v33, -inf }
 0x483   :  { %1150 = vmax.xlane.f32.xlu0 %v1149_v35 }
 0x490   :  { %1184 = vrot.lane.b32.xlu1 %v3733_v12, %s3624_s14 }
 0x494   :  { %1336 = vrot.lane.b32.xlu1 %v3738_v14, %s3624_s14 }
 0x498   :  { %1412 = vrot.lane.b32.xlu1 %v3736_v13, %s3624_s14 }
 0x499   :  { %1260 = vrot.lane.b32.xlu0 %v3731_v11, %s3624_s14 }
 0x49c   :  { %1568 = vrot.lane.b32.xlu1 %v3731_v11, %s3625_s15 }
 0x49d   :  { %1490 = vrot.lane.b32.xlu0 %v3733_v12, %s3625_s15 }
 0x508   :  { %v1142_v36 = vpop.xlane.xlu0 %1141 }
 0x509   :  { %v1152_v37 = vsub.f32 %v902_v23, %v1142_v36 }
 0x50b   :  { %v1156_v38 = vmul.f32 1.442695, %v1152_v37 }
 0x50c   :  { %v1148_v39 = vpop.xlane.xlu0 %1147  ;;  %v1145_v40 = vpop.xlane.xlu1 %1144 }
 0x50d   :  { %3459 = vpow2.f32 %v1156_v38  ;;  %v1153_v41 = vsub.f32 %v980_v27, %v1145_v40  ;;  %v1154_v54 = vsub.f32 %v1058_v28, %v1148_v39 }
 0x50f   :  { %v1158_v42 = vmul.f32 1.442695, %v1153_v41  ;;  %v1160_v55 = vmul.f32 1.442695, %v1154_v54 }
 0x510   :  { %v1185_v43 = vpop.permute.xlu1 %1184  ;;  %v1151_v44 = vpop.xlane.xlu0 %1150 }
 0x511   :  { %v1155_v45 = vsub.f32 %v1136_v33, %v1151_v44  ;;  %3293 = vmatpush3.msra.mxu1 %v1185_v43  ;;  %3461 = vpow2.f32 %v1158_v42 }
 0x512   :  { %3302 = vmatprep.subr.mxu1 %v3618_v10 }
 0x513   :  { %v1162_v46 = vmul.f32 1.442695, %v1155_v45 }
 0x514   :  { %v1261_v47 = vpop.permute.xlu0 %1260  ;;  %v1337_v58 = vpop.permute.xlu1 %1336 }
 0x515   :  { %3463 = vpow2.f32 %v1162_v46  ;;  %3298 = vmatpush3.msra.mxu0 %v1261_v47 }
 0x516   :  { %3307 = vmatprep.subr.mxu0 %v3618_v10  ;;  %3465 = vpow2.f32 %v1160_v55 }
 0x517   :  { %v3460_v48 = vpop.eup %3459 }
 0x518   :  { %v1164_v49 = vsel %vm174_vm2, %v3460_v48, 0.0  ;;  %v1413_v59 = vpop.permute.xlu1 %1412  ;;  %v1491_v62 = vpop.permute.xlu0 %1490 }
 0x519   :  { %1165 = vadd.xlane.f32.xlu1 %v1164_v49 }
 0x51b   :  { %v3462_v50 = vpop.eup %3461 }
 0x51c   :  { %v1167_v51 = vsel %vm174_vm2, %v3462_v50, 0.0  ;;  %v1569_v60 = vpop.permute.xlu1 %1568 }
 0x51d   :  { %1168 = vadd.xlane.f32.xlu0 %v1167_v51 }
 0x51f   :  { %v3464_v52 = vpop.eup %3463 }
 0x520   :  { %v1173_v53 = vsel %vm174_vm2, %v3464_v52, 0.0  ;;  %v3466_v56 = vpop.eup %3465 }
 0x521   :  { %1174 = vadd.xlane.f32.xlu0 %v1173_v53  ;;  %v1170_v57 = vsel %vm174_vm2, %v3466_v56, 0.0 }
 0x52a   :  { %1566 = vrot.lane.b32.xlu1 %v3731_v11, %s3626_s16 }
 0x537   :  { %1488 = vrot.lane.b32.xlu0 %v3733_v12, %s3626_s16 }
 0x53b   :  { %1646 = vrot.lane.b32.xlu0 %v3738_v14, %s3625_s15 }
 0x53f   :  { %1644 = vrot.lane.b32.xlu0 %v3738_v14, %s3626_s16 }
 0x543   :  { %1920 = vrot.lane.b32.xlu0 %v3731_v11, %s3627_s17 }
 0x54e   :  { %1171 = vadd.xlane.f32.xlu1 %v1170_v57 }
 0x55f   :  { %1724 = vrot.lane.b32.xlu1 %v3736_v13, %s3625_s15 }
 0x563   :  { %1722 = vrot.lane.b32.xlu1 %v3736_v13, %s3626_s16 }
 0x567   :  { %1844 = vrot.lane.b32.xlu1 %v3733_v12, %s3627_s17 }
 0x56b   :  { %1996 = vrot.lane.b32.xlu1 %v3738_v14, %s3627_s17 }
 0x56f   :  { %2072 = vrot.lane.b32.xlu1 %v3736_v13, %s3627_s17 }
 0x5a6   :  { %v1166_v61 = vpop.xlane.xlu1 %1165 }
 0x5a7   :  { %3467 = vrcp.f32 %v1166_v61 }
 0x5aa   :  { %v1169_v63 = vpop.xlane.xlu0 %1168  ;;  %v1567_v7 = vpop.permute.xlu1 %1566 }
 0x5ab   :  { %3469 = vrcp.f32 %v1169_v63 }
 0x5ae   :  { %v1175_v0 = vpop.xlane.xlu0 %1174 }
 0x5af   :  { %3471 = vrcp.f32 %v1175_v0 }
 0x5b1   :  { %v3468_v1 = vpop.eup %3467 }
 0x5b2   :  { %v1177_v2 = vmul.f32 %v3468_v1, %v3460_v48  ;;  %v1489_v8 = vpop.permute.xlu0 %1488 }
 0x5b4   :  { %3295 = vmatmul.mubr.msk.f32.vlgmr.msra.gmra.mrb[12].mxu1 %vm174_vm2, %v1177_v2 }
 0x5b5   :  { %3303 = vmatpush3.msra.mxu1 %v1337_v58  ;;  %3304 = vmatprep.mubr.msk.f32.mxu1 %vm3619_vm1, %v3618_v10  ;;  %v3470_v3 = vpop.eup %3469 }
 0x5b6   :  { %3312 = vmatprep.subr.mxu1 %v3618_v10  ;;  %v1179_v4 = vmul.f32 %v3470_v3, %v3462_v50  ;;  %v1647_v9 = vpop.permute.xlu0 %1646 }
 0x5b8   :  { %3300 = vmatmul.mubr.msk.f32.vlgmr.msra.gmra.mrb[16].mxu0 %vm174_vm2, %v1179_v4 }
 0x5b9   :  { %v3472_v5 = vpop.eup %3471  ;;  %3308 = vmatpush3.msra.mxu0 %v1413_v59  ;;  %3309 = vmatprep.mubr.msk.f32.mxu0 %vm3619_vm1, %v3618_v10 }
 0x5ba   :  { %v1183_v6 = vmul.f32 %v3472_v5, %v3464_v52  ;;  %3317 = vmatprep.subr.mxu0 %v3618_v10  ;;  %v1645_v17 = vpop.permute.xlu0 %1644 }
 0x5bc   :  { %3310 = vmatmul.mubr.msk.f32.vlgmr.msra.gmra.mrb[18].mxu0 %vm174_vm2, %v1183_v6 }
 0x5bd   :  { %3319 = vmatprep.mubr.msk.f32.mxu0 %vm3619_vm1, %v3618_v10 }
 0x5be   :  { %v1921_v23 = vpop.permute.xlu0 %1920 }
 0x5c0   :  { %3318 = vmatpush3.xpose.msk.msra.mxu0 %vm174_vm2, %v1569_v60 }
 0x5c1   :  { %3327 = vmatprep.subr.mxu0 %v3618_v10 }
 0x5c3   :  { %3320 = vmatmul.mubr.msk.f32.vlgmr.msra.gmra.mrb[20].mxu0 %vm174_vm2, %v1567_v7 }
 0x5c4   :  { %3329 = vmatprep.mubr.msk.f32.mxu0 %vm3619_vm1, %v3618_v10 }
 0x5db   :  { %v1172_v15 = vpop.xlane.xlu1 %1171 }
 0x5dc   :  { %3473 = vrcp.f32 %v1172_v15 }
 0x5df   :  { %v1725_v19 = vpop.permute.xlu1 %1724 }
 0x5e0   :  { %3328 = vmatpush3.xpose.msk.msra.mxu0 %vm174_vm2, %v1725_v19 }
 0x5e1   :  { %3337 = vmatprep.subr.mxu0 %v3618_v10 }
 0x5e3   :  { %v1723_v21 = vpop.permute.xlu1 %1722 }
 0x5e4   :  { %3330 = vmatmul.mubr.msk.f32.vlgmr.msra.gmra.mrb[22].mxu0 %vm174_vm2, %v1723_v21 }
 0x5e5   :  { %3338 = vmatpush3.msra.mxu0 %v1921_v23  ;;  %3339 = vmatprep.mubr.msk.f32.mxu0 %vm3619_vm1, %v3618_v10 }
 0x5e6   :  { %v3474_v24 = vpop.eup %3473  ;;  %3347 = vmatprep.subr.mxu0 %v3618_v10 }
 0x5e7   :  { %v1181_v25 = vmul.f32 %v3474_v24, %v3466_v56  ;;  %v1845_v26 = vpop.permute.xlu1 %1844 }
 0x5e9   :  { %3305 = vmatmul.mubr.msk.f32.vlgmr.msra.gmra.mrb[14].mxu1 %vm174_vm2, %v1181_v25 }
 0x5ea   :  { %3313 = vmatpush3.xpose.msk.msra.mxu1 %vm174_vm2, %v1491_v62  ;;  %3314 = vmatprep.mubr.msk.f32.mxu1 %vm3619_vm1, %v3618_v10 }
 0x5eb   :  { %3322 = vmatprep.subr.mxu1 %v3618_v10  ;;  %v1997_v47 = vpop.permute.xlu1 %1996 }
 0x5ed   :  { %3315 = vmatmul.mubr.msk.f32.vlgmr.msra.gmra.mrb[16].mxu1 %vm174_vm2, %v1489_v8 }
 0x5ee   :  { %3323 = vmatpush3.xpose.msk.msra.mxu1 %vm174_vm2, %v1647_v9  ;;  %3324 = vmatprep.mubr.msk.f32.mxu1 %vm3619_vm1, %v3618_v10 }
 0x5ef   :  { %3332 = vmatprep.subr.mxu1 %v3618_v10  ;;  %v2073_v48 = vpop.permute.xlu1 %2072 }
 0x5f1   :  { %3325 = vmatmul.mubr.msk.f32.vlgmr.msra.gmra.mrb[18].mxu1 %vm174_vm2, %v1645_v17 }
 0x5f2   :  { %3333 = vmatpush3.msra.mxu1 %v1845_v26  ;;  %3334 = vmatprep.mubr.msk.f32.mxu1 %vm3619_vm1, %v3618_v10 }
 0x5f3   :  { %3342 = vmatprep.subr.mxu1 %v3618_v10 }
 0x687   :  { %v3901_v27 = vpop.f32.mrb[12].mxu1 }
 0x688   :  { %v3296_v28 = vpop.f32.mrb[13].mxu1 }
 0x68b   :  { %v3903_v29 = vpop.f32.mrb[16].mxu0 }
 0x68c   :  { %v3301_v30 = vpop.f32.mrb[17].mxu0 }
 0x68f   :  { %v3905_v31 = vpop.f32.mrb[18].mxu0 }
 0x690   :  { %v3311_v32 = vpop.f32.mrb[19].mxu0 }
 0x696   :  { %v1640_v33 = vpop.f32.mrb[20].mxu0 }
 0x697   :  { %v3321_v34 = vpop.f32.mrb[21].mxu0  ;;  %v1803_v35 = vsel %vm174_vm2, %v1640_v33, -inf }
 0x698   :  { %1804 = vmax.xlane.f32.xlu1 %v1803_v35 }
 0x6a9   :  { %2228 = vrot.lane.b32.xlu1 %v3731_v11, %s3628_s18 }
 0x6ad   :  { %2226 = vrot.lane.b32.xlu1 %v3731_v11, %s3629_s19 }
 0x6b7   :  { %v1796_v36 = vpop.f32.mrb[22].mxu0 }
 0x6b8   :  { %v3331_v37 = vpop.f32.mrb[23].mxu0  ;;  %v1809_v45 = vsel %vm174_vm2, %v1796_v36, -inf }
 0x6bc   :  { %v3912_v38 = vpop.f32.mrb[14].mxu1 }
 0x6bd   :  { %v3306_v39 = vpop.f32.mrb[15].mxu1 }
 0x6c0   :  { %v1562_v40 = vpop.f32.mrb[16].mxu1 }
 0x6c1   :  { %v3316_v41 = vpop.f32.mrb[17].mxu1  ;;  %v1800_v42 = vsel %vm174_vm2, %v1562_v40, -inf }
 0x6c2   :  { %1801 = vmax.xlane.f32.xlu0 %v1800_v42 }
 0x6c4   :  { %v1718_v43 = vpop.f32.mrb[18].mxu1 }
 0x6c5   :  { %v3326_v44 = vpop.f32.mrb[19].mxu1  ;;  %v1806_v46 = vsel %vm174_vm2, %v1718_v43, -inf }
 0x6c6   :  { %1810 = vmax.xlane.f32.xlu0 %v1809_v45 }
 0x6ca   :  { %1807 = vmax.xlane.f32.xlu0 %v1806_v46 }
 0x6e0   :  { %2150 = vrot.lane.b32.xlu0 %v3733_v12, %s3628_s18 }
 0x725   :  { %v1805_v49 = vpop.xlane.xlu1 %1804 }
 0x726   :  { %v1813_v50 = vsub.f32 %v1640_v33, %v1805_v49 }
 0x728   :  { %v1818_v51 = vmul.f32 1.442695, %v1813_v50 }
 0x729   :  { %v2229_v9 = vpop.permute.xlu1 %2228 }
 0x72a   :  { %3475 = vpow2.f32 %v1818_v51 }
 0x72d   :  { %v2227_v15 = vpop.permute.xlu1 %2226 }
 0x734   :  { %v3476_v52 = vpop.eup %3475 }
 0x735   :  { %v1827_v53 = vsel %vm174_vm2, %v3476_v52, 0.0 }
 0x736   :  { %1828 = vadd.xlane.f32.xlu0 %v1827_v53 }
 0x74c   :  { %2148 = vrot.lane.b32.xlu0 %v3733_v12, %s3629_s19 }
 0x74f   :  { %v1802_v54 = vpop.xlane.xlu0 %1801 }
 0x750   :  { %v1812_v55 = vsub.f32 %v1562_v40, %v1802_v54 }
 0x752   :  { %v1816_v56 = vmul.f32 1.442695, %v1812_v55 }
 0x753   :  { %v1811_v57 = vpop.xlane.xlu0 %1810 }
 0x754   :  { %3477 = vpow2.f32 %v1816_v56  ;;  %v1815_v58 = vsub.f32 %v1796_v36, %v1811_v57 }
 0x756   :  { %v1822_v59 = vmul.f32 1.442695, %v1815_v58 }
 0x757   :  { %v1808_v0 = vpop.xlane.xlu0 %1807 }
 0x758   :  { %3479 = vpow2.f32 %v1822_v59  ;;  %v1814_v1 = vsub.f32 %v1718_v43, %v1808_v0 }
 0x75a   :  { %v1820_v2 = vmul.f32 1.442695, %v1814_v1 }
 0x75b   :  { %v2151_v5 = vpop.permute.xlu0 %2150 }
 0x75c   :  { %3481 = vpow2.f32 %v1820_v2 }
 0x75e   :  { %v3478_v60 = vpop.eup %3477 }
 0x75f   :  { %v1824_v61 = vsel %vm174_vm2, %v3478_v60, 0.0 }
 0x760   :  { %1825 = vadd.xlane.f32.xlu1 %v1824_v61 }
 0x762   :  { %v3480_v62 = vpop.eup %3479 }
 0x763   :  { %v1833_v63 = vsel %vm174_vm2, %v3480_v62, 0.0 }
 0x766   :  { %v3482_v3 = vpop.eup %3481 }
 0x767   :  { %v1830_v4 = vsel %vm174_vm2, %v3482_v3, 0.0 }
 0x76b   :  { %1834 = vadd.xlane.f32.xlu0 %v1833_v63 }
 0x771   :  { %2384 = vrot.lane.b32.xlu1 %v3736_v13, %s3628_s18 }
 0x781   :  { %2306 = vrot.lane.b32.xlu0 %v3738_v14, %s3628_s18 }
 0x785   :  { %2304 = vrot.lane.b32.xlu0 %v3738_v14, %s3629_s19 }
 0x795   :  { %1831 = vadd.xlane.f32.xlu1 %v1830_v4 }
 0x7a6   :  { %2382 = vrot.lane.b32.xlu1 %v3736_v13, %s3629_s19 }
 0x7c3   :  { %v1829_v6 = vpop.xlane.xlu0 %1828 }
 0x7c4   :  { %3483 = vrcp.f32 %v1829_v6 }
 0x7c7   :  { %v2149_v19 = vpop.permute.xlu0 %2148 }
 0x7ce   :  { %v3484_v7 = vpop.eup %3483 }
 0x7cf   :  { %v1839_v8 = vmul.f32 %v3484_v7, %v3476_v52 }
 0x7d1   :  { %3340 = vmatmul.mubr.msk.f32.vlgmr.msra.gmra.mrb[24].mxu0 %vm174_vm2, %v1839_v8 }
 0x7d2   :  { %3348 = vmatpush3.msra.mxu0 %v2073_v48  ;;  %3349 = vmatprep.mubr.msk.f32.mxu0 %vm3619_vm1, %v3618_v10 }
 0x7d3   :  { %3357 = vmatprep.subr.mxu0 %v3618_v10 }
 0x7ed   :  { %v1826_v17 = vpop.xlane.xlu1 %1825 }
 0x7ee   :  { %3485 = vrcp.f32 %v1826_v17 }
 0x7f1   :  { %v2385_v28 = vpop.permute.xlu1 %2384 }
 0x7f8   :  { %v3486_v21 = vpop.eup %3485  ;;  %v1835_v24 = vpop.xlane.xlu0 %1834 }
 0x7f9   :  { %v1837_v23 = vmul.f32 %v3486_v21, %v3478_v60  ;;  %3487 = vrcp.f32 %v1835_v24 }
 0x7fb   :  { %3335 = vmatmul.mubr.msk.f32.vlgmr.msra.gmra.mrb[20].mxu1 %vm174_vm2, %v1837_v23 }
 0x7fc   :  { %3343 = vmatpush3.msra.mxu1 %v1997_v47  ;;  %3344 = vmatprep.mubr.msk.f32.mxu1 %vm3619_vm1, %v3618_v10  ;;  %v2307_v35 = vpop.permute.xlu0 %2306 }
 0x7fd   :  { %3352 = vmatprep.subr.mxu1 %v3618_v10 }
 0x800   :  { %v2305_v36 = vpop.permute.xlu0 %2304 }
 0x803   :  { %v3488_v25 = vpop.eup %3487 }
 0x804   :  { %v1843_v26 = vmul.f32 %v3488_v25, %v3480_v62 }
 0x806   :  { %3350 = vmatmul.mubr.msk.f32.vlgmr.msra.gmra.mrb[26].mxu0 %vm174_vm2, %v1843_v26 }
 0x807   :  { %3358 = vmatpush3.xpose.msk.msra.mxu0 %vm174_vm2, %v2229_v9  ;;  %3359 = vmatprep.mubr.msk.f32.mxu0 %vm3619_vm1, %v3618_v10 }
 0x808   :  { %3367 = vmatprep.subr.mxu0 %v3618_v10 }
 0x80a   :  { %3360 = vmatmul.mubr.msk.f32.vlgmr.msra.gmra.mrb[28].mxu0 %vm174_vm2, %v2227_v15 }
 0x80b   :  { %3368 = vmatpush3.xpose.msk.msra.mxu0 %vm174_vm2, %v2385_v28  ;;  %3369 = vmatprep.mubr.msk.f32.mxu0 %vm3619_vm1, %v3618_v10 }
 0x80c   :  { %3377 = vmatprep.subr.mxu0 %v3618_v10 }
 0x822   :  { %v1832_v30 = vpop.xlane.xlu1 %1831 }
 0x823   :  { %3489 = vrcp.f32 %v1832_v30 }
 0x826   :  { %v2383_v32 = vpop.permute.xlu1 %2382 }
 0x827   :  { %3370 = vmatmul.mubr.msk.f32.vlgmr.msra.gmra.mrb[30].mxu0 %vm174_vm2, %v2383_v32 }
 0x828   :  { %3379 = vmatprep.mubr.msk.f32.mxu0 %vm3619_vm1, %v3618_v10 }
 0x82d   :  { %v3490_v33 = vpop.eup %3489 }
 0x82e   :  { %v1841_v34 = vmul.f32 %v3490_v33, %v3482_v3 }
 0x830   :  { %3345 = vmatmul.mubr.msk.f32.vlgmr.msra.gmra.mrb[22].mxu1 %vm174_vm2, %v1841_v34  ;;  %v2870_v34 = vld [vmem:[#allocation7] sm:$0xff] }
 0x831   :  { %3353 = vmatpush3.xpose.msk.msra.mxu1 %vm174_vm2, %v2151_v5  ;;  %3354 = vmatprep.mubr.msk.f32.mxu1 %vm3619_vm1, %v3618_v10 }
 0x832   :  { %3362 = vmatprep.subr.mxu1 %v3618_v10 }
 0x834   :  { %3355 = vmatmul.mubr.msk.f32.vlgmr.msra.gmra.mrb[24].mxu1 %vm174_vm2, %v2149_v19 }
 0x835   :  { %3363 = vmatpush3.xpose.msk.msra.mxu1 %vm174_vm2, %v2307_v35  ;;  %3364 = vmatprep.mubr.msk.f32.mxu1 %vm3619_vm1, %v3618_v10  ;;  %v2871_v35 = vld [vmem:[#allocation7 + $0x8] sm:$0xff] }
 0x836   :  { %3372 = vmatprep.subr.mxu1 %v3618_v10 }
 0x838   :  { %3365 = vmatmul.mubr.msk.f32.vlgmr.msra.gmra.mrb[26].mxu1 %vm174_vm2, %v2305_v36  ;;  %v2872_v36 = vld [vmem:[#allocation7 + $0x10] sm:$0xff] }
 0x839   :  { %3374 = vmatprep.mubr.msk.f32.mxu1 %vm3619_vm1, %v3618_v10 }
 0x8a4   :  { %v3967_v37 = vpop.f32.mrb[24].mxu0 }
 0x8a5   :  { %v3341_v39 = vpop.f32.mrb[25].mxu0 }
 0x8a6   :  { %v2873_v39 = vld [vmem:[#allocation7 + $0x18] sm:$0xff] }
 0x8ce   :  { %v1916_v40 = vpop.f32.mrb[20].mxu1 }
 0x8cf   :  { %v3336_v41 = vpop.f32.mrb[21].mxu1 }
 0x8d9   :  { %v3969_v42 = vpop.f32.mrb[26].mxu0 }
 0x8da   :  { %v3351_v43 = vpop.f32.mrb[27].mxu0 }
 0x8dd   :  { %v2300_v44 = vpop.f32.mrb[28].mxu0 }
 0x8de   :  { %v3361_v45 = vpop.f32.mrb[29].mxu0  ;;  %v2463_v46 = vsel %vm174_vm2, %v2300_v44, -inf }
 0x8df   :  { %2464 = vmax.xlane.f32.xlu1 %v2463_v46 }
 0x8f0   :  { %2504 = vrot.lane.b32.xlu1 %v3733_v12, %s3630_s20 }
 0x8fa   :  { %v2456_v47 = vpop.f32.mrb[30].mxu0 }
 0x8fb   :  { %v3371_v48 = vpop.f32.mrb[31].mxu0  ;;  %v2469_v57 = vsel %vm174_vm2, %v2456_v47, -inf }
 0x903   :  { %v2068_v49 = vpop.f32.mrb[22].mxu1 }
 0x904   :  { %v3346_v50 = vpop.f32.mrb[23].mxu1 }
 0x907   :  { %v2222_v51 = vpop.f32.mrb[24].mxu1 }
 0x908   :  { %v3356_v52 = vpop.f32.mrb[25].mxu1  ;;  %v2460_v53 = vsel %vm174_vm2, %v2222_v51, -inf }
 0x909   :  { %2461 = vmax.xlane.f32.xlu0 %v2460_v53 }
 0x90b   :  { %v2378_v54 = vpop.f32.mrb[26].mxu1 }
 0x90c   :  { %v3366_v55 = vpop.f32.mrb[27].mxu1  ;;  %v2466_v56 = vsel %vm174_vm2, %v2378_v54, -inf }
 0x90d   :  { %2467 = vmax.xlane.f32.xlu0 %v2466_v56 }
 0x911   :  { %2470 = vmax.xlane.f32.xlu0 %v2469_v57 }
 0x96c   :  { %v2465_v58 = vpop.xlane.xlu1 %2464 }
 0x96d   :  { %v2473_v59 = vsub.f32 %v2300_v44, %v2465_v58 }
 0x96f   :  { %v2478_v12 = vmul.f32 1.442695, %v2473_v59 }
 0x970   :  { %v2505_v60 = vpop.permute.xlu1 %2504 }
 0x971   :  { %3491 = vpow2.f32 %v2478_v12  ;;  %3373 = vmatpush3.msra.mxu1 %v2505_v60 }
 0x972   :  { %3382 = vmatprep.subr.mxu1 %v3618_v10 }
 0x97b   :  { %v3492_v61 = vpop.eup %3491 }
 0x97c   :  { %v2487_v62 = vsel %vm174_vm2, %v3492_v61, 0.0 }
 0x97d   :  { %2488 = vadd.xlane.f32.xlu0 %v2487_v62 }
 0x996   :  { %v2462_v63 = vpop.xlane.xlu0 %2461 }
 0x997   :  { %v2472_v0 = vsub.f32 %v2222_v51, %v2462_v63 }
 0x999   :  { %v2476_v1 = vmul.f32 1.442695, %v2472_v0 }
 0x99a   :  { %v2468_v2 = vpop.xlane.xlu0 %2467 }
 0x99b   :  { %3493 = vpow2.f32 %v2476_v1  ;;  %v2474_v15 = vsub.f32 %v2378_v54, %v2468_v2 }
 0x99d   :  { %v2480_v17 = vmul.f32 1.442695, %v2474_v15  ;;  %v3516_v15 = vld [vmem:[#allocation2] sm:$0xff] }
 0x99e   :  { %v2471_v3 = vpop.xlane.xlu0 %2470 }
 0x99f   :  { %v2475_v4 = vsub.f32 %v2456_v47, %v2471_v3 }
 0x9a1   :  { %v2482_v5 = vmul.f32 1.442695, %v2475_v4 }
 0x9a3   :  { %3495 = vpow2.f32 %v2482_v5 }
 0x9a4   :  { %3497 = vpow2.f32 %v2480_v17 }
 0x9a5   :  { %v3494_v6 = vpop.eup %3493 }
 0x9a6   :  { %v2484_v7 = vsel %vm174_vm2, %v3494_v6, 0.0 }
 0x9a7   :  { %2485 = vadd.xlane.f32.xlu1 %v2484_v7 }
 0x9ad   :  { %v3496_v8 = vpop.eup %3495 }
 0x9ae   :  { %v2493_v9 = vsel %vm174_vm2, %v3496_v8, 0.0  ;;  %v3498_v19 = vpop.eup %3497 }
 0x9af   :  { %2494 = vadd.xlane.f32.xlu0 %v2493_v9  ;;  %v2490_v21 = vsel %vm174_vm2, %v3498_v19, 0.0 }
 0x9b8   :  { %2656 = vrot.lane.b32.xlu1 %v3738_v14, %s3630_s20 }
 0x9c5   :  { %2580 = vrot.lane.b32.xlu0 %v3731_v11, %s3630_s20 }
 0x9c9   :  { %2812 = vrot.lane.b32.xlu0 %v3901_v27, %s3616_s10 }
 0x9cd   :  { %2828 = vrot.lane.b32.xlu0 %v1916_v40, %s3631_s1  ;;  %v3418_v40 = vpack.c.bf16 %v2873_v39, %v2872_v36 }
 0x9d1   :  { %2816 = vrot.lane.b32.xlu0 %v3912_v38, %s3616_s10 }
 0x9d5   :  { %2832 = vrot.lane.b32.xlu0 %v2068_v49, %s3631_s1 }
 0x9dc   :  { %2491 = vadd.xlane.f32.xlu1 %v2490_v21 }
 0x9ed   :  { %2732 = vrot.lane.b32.xlu1 %v3736_v13, %s3630_s20 }
 0x9f1   :  { %2814 = vrot.lane.b32.xlu1 %v3903_v29, %s3616_s10 }
 0x9f5   :  { %2830 = vrot.lane.b32.xlu1 %v3967_v37, %s3631_s1  ;;  %v3414_v37 = vpack.c.bf16 %v2871_v35, %v2870_v34 }
 0x9f9   :  { %2818 = vrot.lane.b32.xlu1 %v3905_v31, %s3616_s10 }
 0x9fd   :  { %2834 = vrot.lane.b32.xlu1 %v3969_v42, %s3631_s1 }
 0xa0a   :  { %v2489_v11 = vpop.xlane.xlu0 %2488 }
 0xa0b   :  { %3499 = vrcp.f32 %v2489_v11 }
 0xa15   :  { %v3500_v38 = vpop.eup %3499 }
 0xa16   :  { %v2499_v24 = vmul.f32 %v3500_v38, %v3492_v61 }
 0xa34   :  { %v2486_v14 = vpop.xlane.xlu1 %2485 }
 0xa35   :  { %3501 = vrcp.f32 %v2486_v14 }
 0xa38   :  { %v2657_v26 = vpop.permute.xlu1 %2656 }
 0xa3c   :  { %v2495_v27 = vpop.xlane.xlu0 %2494 }
 0xa3d   :  { %3503 = vrcp.f32 %v2495_v27 }
 0xa3f   :  { %v3502_v23 = vpop.eup %3501 }
 0xa40   :  { %v2497_v25 = vmul.f32 %v3502_v23, %v3494_v6  ;;  %v2581_v13 = vpop.permute.xlu0 %2580  ;;  %v3517_v23 = vld [vmem:[#allocation2 + $0x10] sm:$0xff] }
 0xa41   :  { %3378 = vmatpush3.msra.mxu0 %v2581_v13  ;;  %v3518_v13 = vld [vmem:[#allocation2 + $0x18] sm:$0xff] }
 0xa42   :  { %3375 = vmatmul.mubr.msk.f32.vlgmr.msra.gmra.mrb[28].mxu1 %vm174_vm2, %v2497_v25  ;;  %3380 = vmatmul.mubr.msk.f32.vlgmr.msra.gmra.mrb[32].mxu0 %vm174_vm2, %v2499_v24 }
 0xa43   :  { %3383 = vmatpush3.msra.mxu1 %v2657_v26  ;;  %3387 = vmatprep.subr.mxu0 %v3618_v10 }
 0xa44   :  { %3389 = vmatprep.mubr.msk.f32.mxu0 %vm3619_vm1, %v3618_v10  ;;  %3384 = vmatprep.mubr.msk.f32.mxu1 %vm3619_vm1, %v3618_v10  ;;  %v2813_v48 = vpop.permute.xlu0 %2812 }
 0xa45   :  { %3415 = vmatprep.subr.bf16.mxu1 %v3414_v37  ;;  %v2856_v56 = vsel %vm174_vm2, %v3827_v16, %v2813_v48 }
 0xa47   :  { %v3504_v31 = vpop.eup %3503 }
 0xa48   :  { %v2503_v28 = vmul.f32 %v3504_v31, %v3496_v8  ;;  %v2829_v50 = vpop.permute.xlu0 %2828 }
 0xa49   :  { %v2861_v58 = vsel %vm2860_vm3, %v2856_v56, %v2829_v50  ;;  %v3136_v56 = vld [vmem:[%s4067_s4] ss:$0 sm:$0xff]  ;;  %s3633_s4 = smov [#allocation8]  }
 0xa4c   :  { %v2817_v52 = vpop.permute.xlu0 %2816 }
 0xa4d   :  { %v2858_v16 = vsel %vm174_vm2, %v3831_v20, %v2817_v52  ;;  %v3131_v20 = vld [vmem:[%s4066_s3] ss:$0 sm:$0xff] }
 0xa50   :  { %v2833_v54 = vpop.permute.xlu0 %2832 }
 0xa69   :  { %v2492_v29 = vpop.xlane.xlu1 %2491 }
 0xa6a   :  { %3505 = vrcp.f32 %v2492_v29 }
 0xa6d   :  { %v2733_v30 = vpop.permute.xlu1 %2732 }
 0xa6e   :  { %3388 = vmatpush3.msra.mxu0 %v2733_v30 }
 0xa6f   :  { %3390 = vmatmul.mubr.msk.f32.vlgmr.msra.gmra.mrb[34].mxu0 %vm174_vm2, %v2503_v28 }
 0xa71   :  { %v2815_v49 = vpop.permute.xlu1 %2814 }
 0xa72   :  { %v2857_v57 = vsel %vm174_vm2, %v3829_v18, %v2815_v49  ;;  %v2863_v18 = vsel %vm2860_vm3, %v2858_v16, %v2833_v54 }
 0xa74   :  { %v3506_v32 = vpop.eup %3505 }
 0xa75   :  { %v2501_v33 = vmul.f32 %v3506_v32, %v3498_v19  ;;  %v2831_v51 = vpop.permute.xlu1 %2830 }
 0xa76   :  { %v2862_v59 = vsel %vm2860_vm3, %v2857_v57, %v2831_v51 }
 0xa77   :  { %3385 = vmatmul.mubr.msk.f32.vlgmr.msra.gmra.mrb[30].mxu1 %vm174_vm2, %v2501_v33 }
 0xa78   :  { %3417 = vmatpush3.bf16.msra.mxu1 %v3414_v37 }
 0xa79   :  { %3419 = vmatprep.subr.bf16.mxu1 %v3418_v40  ;;  %v2819_v53 = vpop.permute.xlu1 %2818 }
 0xa7a   :  { %v2859_v0 = vsel %vm174_vm2, %v3833_v22, %v2819_v53  ;;  %v3515_v22 = vld [vmem:[#allocation2 + $0x8] sm:$0xff] }
 0xa7c   :  { %3421 = vmatpush3.bf16.msra.mxu1 %v3418_v40 }
 0xa7d   :  { %v2835_v55 = vpop.permute.xlu1 %2834 }
 0xa7e   :  { %v2864_v2 = vsel %vm2860_vm3, %v2859_v0, %v2835_v55 }
 0xb15   :  { %v2576_v10 = vpop.f32.mrb[28].mxu1  ;;  %v2652_v41 = vpop.f32.mrb[32].mxu0 }
 0xb16   :  { %v3376_v42 = vpop.f32.mrb[29].mxu1  ;;  %2844 = vrot.lane.b32.xlu0 %v2576_v10, %s3632_s21  ;;  %2846 = vrot.lane.b32.xlu1 %v2652_v41, %s3632_s21  ;;  %v3381_v43 = vpop.f32.mrb[33].mxu0 }
 0xb42   :  { %v2804_v44 = vpop.f32.mrb[34].mxu0 }
 0xb43   :  { %2850 = vrot.lane.b32.xlu1 %v2804_v44, %s3632_s21  ;;  %v3391_v45 = vpop.f32.mrb[35].mxu0 }
 0xb4a   :  { %v2728_v46 = vpop.f32.mrb[30].mxu1 }
 0xb4b   :  { %v3386_v47 = vpop.f32.mrb[31].mxu1  ;;  %2848 = vrot.lane.b32.xlu0 %v2728_v46, %s3632_s21 }
 0xb88   :  { %v2845_v12 = vpop.permute.xlu0 %2844  ;;  %v2847_v60 = vpop.permute.xlu1 %2846 }
 0xb89   :  { %v2866_v61 = vsel %vm2865_vm4, %v2861_v58, %v2845_v12  ;;  %v2867_v62 = vsel %vm2865_vm4, %v2862_v59, %v2847_v60  ;;  %v3137_v12 = vld [vmem:[%s4068_s5] ss:$0 sm:$0xff]  ;;  %s3066_s5 = sshll.u32 %s3633_s4, 4  ;;  %s3067_s5 = int_to_ptr.vmem [resolvable:$true] %s3066_s5 }
 0xb8a   :  { %3400 = vmatprep.mubr.msk.f32.mxu1 %vm73_vm0, %v2866_v61  ;;  %s3585_s28 = scalar_lea.vmem %s3067_s5, 512  ;;  %p3590_p11 = scmp.lt.s32.totalorder %s3067_s5, %s3067_s5 }
 0xb8b   :  { %3401 = vmatmul.mubr.msk.f32.vlgmr.msra.gmra.mrb[32].mxu1 %vm73_vm0, %v2867_v62  ;;  %p3586_p10 = scmp.ne.s32.totalorder %s3067_s5, %s3585_s28  ;;  %p3591_p12 = scmp.lt.s32.totalorder %s3585_s28, %s3585_s28 }
 0xb8d   :  { %p3592_p13 = por %p3591_p12, %p3590_p11 }
 0xb8f   :  { %p3593_p0 = pnand %p3592_p13, %p3586_p10 }
 0xbb5   :  { %v2851_v63 = vpop.permute.xlu1 %2850 }
 0xbb6   :  { %v2869_v4 = vsel %vm2865_vm4, %v2864_v2, %v2851_v63 }
 0xbbd   :  { %v2849_v1 = vpop.permute.xlu0 %2848 }
 0xbbe   :  { %v2868_v3 = vsel %vm2865_vm4, %v2863_v18, %v2849_v1 }
 0xbbf   :  { %3403 = vmatprep.mubr.msk.f32.mxu1 %vm73_vm0, %v2868_v3 }
 0xbc0   :  { %3404 = vmatmul.mubr.msk.f32.gmra.mrb[34].mxu1 %vm73_vm0, %v2869_v4 }
 0xc5e   :  { %v3402_v5 = vpop.f32.mrb[32].mxu1 }
 0xc5f   :  { %v2965_v6 = vadd.f32 %v3402_v5, %v3131_v20  ;;  %v2959_v7 = vpop.f32.mrb[33].mxu1 }
 0xc60   :  { %v2960_v8 = vadd.f32 %v3131_v20, %v2959_v7 }
 0xc61   :  { %v2979_v9 = vadd.f32 %v3515_v22, %v2965_v6 }
 0xc62   :  { %v2978_v17 = vadd.f32 %v3516_v15, %v2960_v8 }
 0xc63   :  { %v2985_v19 = vsel %vm73_vm0, %v2979_v9, 0.0 }
 0xc64   :  { %2986 = vadd.xlane.f32.xlu1 %v2985_v19  ;;  %v2982_v21 = vsel %vm73_vm0, %v2978_v17, 0.0 }
 0xc65   :  { %2983 = vadd.xlane.f32.xlu0 %v2982_v21 }
 0xc93   :  { %v3405_v11 = vpop.f32.mrb[34].mxu1 }
 0xc94   :  { %v2969_v14 = vpop.f32.mrb[35].mxu1  ;;  %v2975_v27 = vadd.f32 %v3405_v11, %v3131_v20 }
 0xc95   :  { %v2970_v38 = vadd.f32 %v3131_v20, %v2969_v14 }
 0xc96   :  { %v2981_v26 = vadd.f32 %v3518_v13, %v2975_v27 }
 0xc97   :  { %v2980_v24 = vadd.f32 %v3517_v23, %v2970_v38 }
 0xc98   :  { %v2991_v29 = vsel %vm73_vm0, %v2981_v26, 0.0 }
 0xc99   :  { %v2988_v25 = vsel %vm73_vm0, %v2980_v24, 0.0 }
 0xc9a   :  { %2989 = vadd.xlane.f32.xlu0 %v2988_v25 }
 0xc9e   :  { %2992 = vadd.xlane.f32.xlu0 %v2991_v29 }
 0xcf1   :  { %v2987_v31 = vpop.xlane.xlu1 %2986 }
 0xcf2   :  { %v2996_v28 = vmul.f32 0.03125, %v2987_v31  ;;  %v2984_v30 = vpop.xlane.xlu0 %2983 }
 0xcf3   :  { %v2995_v32 = vmul.f32 0.03125, %v2984_v30 }
 0xcf4   :  { %v3000_v33 = vsub.f32 %v2979_v9, %v2996_v28 }
 0xcf5   :  { %v2999_v34 = vsub.f32 %v2978_v17, %v2995_v32 }
 0xcf6   :  { %v3004_v35 = vmul.f32 %v3000_v33, %v3000_v33 }
 0xcf7   :  { %v3003_v36 = vmul.f32 %v2999_v34, %v2999_v34 }
 0xcf8   :  { %v3010_v37 = vsel %vm73_vm0, %v3004_v35, 0.0 }
 0xcf9   :  { %3011 = vadd.xlane.f32.xlu0 %v3010_v37  ;;  %v3007_v39 = vsel %vm73_vm0, %v3003_v36, 0.0 }
 0xcfa   :  { %3008 = vadd.xlane.f32.xlu1 %v3007_v39 }
 0xd27   :  { %v2990_v40 = vpop.xlane.xlu0 %2989 }
 0xd28   :  { %v2997_v10 = vmul.f32 0.03125, %v2990_v40 }
 0xd2a   :  { %v3001_v41 = vsub.f32 %v2980_v24, %v2997_v10 }
 0xd2b   :  { %v2993_v42 = vpop.xlane.xlu0 %2992 }
 0xd2c   :  { %v2998_v43 = vmul.f32 0.03125, %v2993_v42  ;;  %v3005_v44 = vmul.f32 %v3001_v41, %v3001_v41 }
 0xd2e   :  { %v3002_v45 = vsub.f32 %v2981_v26, %v2998_v43  ;;  %v3013_v46 = vsel %vm73_vm0, %v3005_v44, 0.0 }
 0xd2f   :  { %3014 = vadd.xlane.f32.xlu1 %v3013_v46 }
 0xd30   :  { %v3006_v47 = vmul.f32 %v3002_v45, %v3002_v45 }
 0xd32   :  { %v3016_v48 = vsel %vm73_vm0, %v3006_v47, 0.0 }
 0xd33   :  { %3017 = vadd.xlane.f32.xlu0 %v3016_v48 }
 0xd86   :  { %v3012_v49 = vpop.xlane.xlu0 %3011 }
 0xd87   :  { %v3020_v50 = vmul.f32 0.03125, %v3012_v49  ;;  %v3009_v51 = vpop.xlane.xlu1 %3008 }
 0xd88   :  { %v3019_v52 = vmul.f32 0.03125, %v3009_v51 }
 0xd89   :  { %v3024_v53 = vadd.f32 1e-05, %v3020_v50 }
 0xd8a   :  { %v3023_v54 = vadd.f32 1e-05, %v3019_v52 }
 0xd8b   :  { %3507 = vrsqrt.f32 %v3024_v53 }
 0xd8c   :  { %3509 = vrsqrt.f32 %v3023_v54 }
 0xd95   :  { %v3508_v55 = vpop.eup %3507 }
 0xd96   :  { %v3510_v57 = vpop.eup %3509  ;;  %v3032_v58 = vmul.f32 %v3508_v55, %v3000_v33 }
 0xd97   :  { %v3031_v59 = vmul.f32 %v3510_v57, %v2999_v34 }
 0xd98   :  { %v3043_v60 = vmul.f32 %v3136_v56, %v3032_v58 }
 0xd99   :  { %v3042_v61 = vmul.f32 %v3136_v56, %v3031_v59 }
 0xd9a   :  { %v3054_v62 = vadd.f32 %v3137_v12, %v3043_v60 }
 0xd9b   :  { %v3053_v16 = vadd.f32 %v3137_v12, %v3042_v61 }
 0xd9c   :  { %3058 = vst.msk [vmem:[#allocation8 + $0x8] sm:$0xff] %vm73_vm0, %v3054_v62 }
 0xd9d   :  { %3057 = vst.msk [vmem:[#allocation8] sm:$0xff] %vm73_vm0, %v3053_v16 }
 0xdbc   :  { %v3015_v63 = vpop.xlane.xlu1 %3014 }
 0xdbd   :  { %v3021_v18 = vmul.f32 0.03125, %v3015_v63 }
 0xdbf   :  { %v3025_v0 = vadd.f32 1e-05, %v3021_v18 }
 0xdc0   :  { %v3018_v1 = vpop.xlane.xlu0 %3017 }
 0xdc1   :  { %3511 = vrsqrt.f32 %v3025_v0  ;;  %v3022_v2 = vmul.f32 0.03125, %v3018_v1 }
 0xdc3   :  { %v3026_v3 = vadd.f32 1e-05, %v3022_v2 }
 0xdc5   :  { %3513 = vrsqrt.f32 %v3026_v3 }
 0xdcb   :  { %v3512_v4 = vpop.eup %3511 }
 0xdcc   :  { %v3033_v20 = vmul.f32 %v3512_v4, %v3001_v41 }
 0xdce   :  { %v3044_v5 = vmul.f32 %v3136_v56, %v3033_v20 }
 0xdcf   :  { %v3514_v6 = vpop.eup %3513 }
 0xdd0   :  { %v3034_v7 = vmul.f32 %v3514_v6, %v3002_v45  ;;  %v3055_v8 = vadd.f32 %v3137_v12, %v3044_v5 }
 0xdd2   :  { %v3045_v22 = vmul.f32 %v3136_v56, %v3034_v7  ;;  %3059 = vst.msk [vmem:[#allocation8 + $0x10] sm:$0xff] %vm73_vm0, %v3055_v8 }
 0xdd4   :  { %v3056_v9 = vadd.f32 %v3137_v12, %v3045_v22 }
 0xdd6   :  { %3060 = vst.msk [vmem:[#allocation8 + $0x18] sm:$0xff] %vm73_vm0, %v3056_v9 }
 0xdd7   :  { %3596 = shalt.err (!%p3593_p0)
}
 0xdd8   :  { %s3597_s7 = scalar_lea.hbm %s4069_s6, 512 }
 0xdd9   :  { %p3598_p1 = scmp.ne.s32.totalorder %s4069_s6, %s3597_s7  ;;  %p3601_p2 = scmp.lt.u32.totalorder %s3597_s7, %s4069_s6 }
 0xddb   :  { %p3603_p3 = pnand %p3601_p2, %p3598_p1 }
 0xddd   :  { %3606 = shalt.err (!%p3603_p3)
}
 0xdde   :  { %3072 = dma.vmem_to_hbm [thread:$0]  %s3067_s5, 512, %s4069_s6, [#allocation4], %s3615_s9, %s3615_s9, %s3616_s10  }
 0xddf   :  { %3611 = dma.done.wait [#allocation4], 512  }
 0xde0   :  { %3612 = vsyncadd [#allocation4], 4294966784 }
 0xde1   :  { %3076 = vsyncpa [#allocation3], 1 }
 0xde2   :  { %3077 = vsyncpa [#allocation6], 1 }
 0xde3   :  { %3078 = vsyncpa [#allocation4], 1 }

</bundles_post_ra>
